<compile_context>
chip_gen: v7x
topology: tpu7x:2x2x1
jax: 0.10.0
libtpu: 0.0.40
codegen_flags: <defaults>
</compile_context>

<pallas_src>
import numpy as np
import jax
import jax.numpy as jnp
from jax.experimental import pallas as pl
from jax.experimental.pallas import tpu as pltpu

# ----------------------------- configuration --------------------------------
N_BATCH = 2
CIN, COUT = 4, 8          # in_channels != out_channels -> down / residual unit_tcn paths
T, V = 8, 16              # time steps, joints   (T*V = 128 = lane width)
NSUB = 3                  # num_subset of the adjacency
IC = COUT // 4            # inter_channels of unit_gcn (coff_embedding=4)
BC = COUT // 4            # branch_channels of tcn1
BCR = COUT // 4           # branch_channels of the residual unit_tcn
EPS = 1e-5                # BatchNorm eps
CP = 8                    # padded channel dim used inside the kernel (== COUT)
TV = T * V                # 128
CT = CIN * T              # 32
ICT = IC * T              # 16


# ------------------------------- small helpers -------------------------------

def bn_fold(g, b, m, v):
    s = g * jax.lax.rsqrt(v + EPS)
    return s, b - m * s


def pad_rc(a, r, c):
    a = jnp.asarray(a, jnp.float32)
    return jnp.pad(a, ((0, r - a.shape[0]), (0, c - a.shape[1])))


def eca_band(w):                    # conv1d(1,1,3,pad=1) over channels as (COUT,COUT) band matrix
    w = np.asarray(w)
    E = np.zeros((COUT, COUT), np.float32)
    for c in range(COUT):
        for k in range(3):
            cc = c + k - 1
            if 0 <= cc < COUT:
                E[c, cc] = w[k]
    return jnp.asarray(E)


# ------------------------- parameter construction ----------------------------

def make_params(seed=0):
    keys = iter(jax.random.split(jax.random.PRNGKey(seed), 128))

    def nrm(shape, s=0.2):
        return s * jax.random.normal(next(keys), shape, dtype=jnp.float32)

    def bn_p(c):  # (gamma, beta, running_mean, running_var)  -- eval-mode BN params
        return (1.0 + 0.1 * jax.random.normal(next(keys), (c,), jnp.float32),
                0.05 * jax.random.normal(next(keys), (c,), jnp.float32),
                0.1 * jax.random.normal(next(keys), (c,), jnp.float32),
                0.5 + jax.random.uniform(next(keys), (c,), jnp.float32))

    p = {}
    # unit_gcn
    p['A'] = 0.2 * jax.random.normal(next(keys), (NSUB, V, V), jnp.float32)
    p['PA'] = jnp.full((NSUB, V, V), 1e-6, jnp.float32)
    p['Wa'] = nrm((NSUB, IC, CIN), 0.4); p['ba'] = nrm((NSUB, IC), 0.05)
    p['Wb'] = nrm((NSUB, IC, CIN), 0.4); p['bb'] = nrm((NSUB, IC), 0.05)
    p['Wd'] = nrm((NSUB, COUT, CIN), 0.3); p['bd'] = nrm((NSUB, COUT), 0.05)
    p['gcn_bn'] = bn_p(COUT)
    p['Wdown'] = nrm((COUT, CIN), 0.3); p['bdown'] = nrm((COUT,), 0.05)
    p['down_bn'] = bn_p(COUT)
    # tcn1 = unit_tcn(COUT, COUT, kernel_size=9, stride=1)
    p['t_W1'] = nrm((BC, COUT), 0.3); p['t_b1'] = nrm((BC,), 0.05); p['t_bn1'] = bn_p(BC)
    p['t_W2'] = nrm((BC, BC, 9), 0.2); p['t_b2'] = nrm((BC,), 0.05); p['t_bn2'] = bn_p(BC)
    p['t_W3'] = nrm((COUT, BC), 0.3); p['t_b3'] = nrm((COUT,), 0.05); p['t_bn3'] = bn_p(COUT)
    # residual = unit_tcn(CIN, COUT, kernel_size=1, stride=1)
    p['r_Wres'] = nrm((COUT, CIN), 0.3); p['r_bres'] = nrm((COUT,), 0.05)
    p['r_W1'] = nrm((BCR, CIN), 0.3); p['r_b1'] = nrm((BCR,), 0.05); p['r_bn1'] = bn_p(BCR)
    p['r_W2'] = nrm((BCR, BCR, 1), 0.3); p['r_b2'] = nrm((BCR,), 0.05); p['r_bn2'] = bn_p(BCR)
    p['r_W3'] = nrm((COUT, BCR), 0.3); p['r_b3'] = nrm((COUT,), 0.05); p['r_bn3'] = bn_p(COUT)
    p['top_bn'] = bn_p(COUT)
    # ECAAttention(kernel_size=3): Conv1d(1,1,3,pad=1)
    p['eca_w'] = nrm((3,), 0.5); p['eca_b'] = nrm((), 0.1)
    return p


# --------------------------- fused Pallas forward -----------------------------

def tcn_gcn_unit_forward(x, p):
    """x: (N, CIN, T, V) float32 -> (N, COUT, T, V)."""
    N = x.shape[0]
    f32 = jnp.float32

    # --- activation layouts (wrapper-side layout plumbing only) ---
    x_ld = jnp.pad(x.reshape(N, CIN, TV), ((0, 0), (0, CP - CIN), (0, 0)))   # (N, 8, 128)
    x_ctv = x.reshape(N, CT, V)                                              # (N, 32, 16)
    x_vct = jnp.transpose(x_ctv, (0, 2, 1))                                  # (N, 16, 32)

    eyeT = jnp.eye(T, dtype=f32)

    # --- unit_gcn attention-side weights (the only kron-expanded ones, tiny) ---
    inv = 1.0 / float(ICT)
    waT_w = jnp.concatenate([jnp.kron(p['Wa'][i].T, eyeT) for i in range(NSUB)], axis=1) * inv
    waT_b = jnp.concatenate([jnp.repeat(p['ba'][i], T) for i in range(NSUB)]).reshape(1, -1) * inv
    waT_p = jnp.concatenate([waT_w, waT_b], axis=0)                          # (33, 48)

    wb_w = jnp.concatenate([jnp.kron(p['Wb'][i], eyeT) for i in range(NSUB)], axis=0)
    wb_b = jnp.concatenate([jnp.repeat(p['bb'][i], T) for i in range(NSUB)]).reshape(-1, 1)
    wb_p = jnp.concatenate([wb_w, wb_b], axis=1)                             # (48, 33)

    apa = p['A'] + p['PA']                                                   # (3, 16, 16)

    # --- BatchNorm folds (eval mode) ---
    gs, gh = bn_fold(*p['gcn_bn'])
    ds_, dh_ = bn_fold(*p['down_bn'])
    s1, h1 = bn_fold(*p['t_bn1']); s2, h2 = bn_fold(*p['t_bn2']); s3, h3 = bn_fold(*p['t_bn3'])
    q1, g1 = bn_fold(*p['r_bn1']); q2, g2 = bn_fold(*p['r_bn2']); q3, g3 = bn_fold(*p['r_bn3'])
    ts_, th_ = bn_fold(*p['top_bn'])

    # --- unit_gcn: fold the gcn-BN scale into conv_d weights; merge all gcn biases ---
    wd_scaled = (p['Wd'] * gs[None, :, None]).reshape(NSUB * COUT, CIN)
    wd_stack = pad_rc(wd_scaled, NSUB * COUT, CP)                            # (24, 8)
    gdn_w = pad_rc(p['Wdown'] * ds_[:, None], CP, CP)                        # down path (BN folded)
    g_b = ((p['bd'].sum(axis=0) * gs + gh) + (p['bdown'] * ds_ + dh_)).reshape(CP, 1)

    # --- tcn1: conv1/bn1 kept; conv2/bn2 + conv3/bn3 + top-BN scale folded into one (8,72) slab ---
    t1_w = pad_rc(p['t_W1'] * s1[:, None], CP, CP)
    t1_b = pad_rc((p['t_b1'] * s1 + h1).reshape(BC, 1), CP, 1)
    W3p = pad_rc(p['t_W3'] * s3[:, None], CP, CP)
    b3p = (p['t_b3'] * s3 + h3).reshape(CP, 1)
    b2p = pad_rc((p['t_b2'] * s2 + h2).reshape(BC, 1), CP, 1)
    w23_cols = []
    for k in range(9):
        A2k = pad_rc(p['t_W2'][:, :, k] * s2[:, None], CP, CP)
        w23_cols.append(ts_[:, None] * jnp.dot(W3p, A2k))
    w23 = jnp.concatenate(w23_cols, axis=1)                                  # (8, 72)
    b23 = ts_.reshape(CP, 1) * (jnp.dot(W3p, b2p) + b3p)                     # (8, 1)

    # --- residual unit_tcn(CIN, COUT, k=1): pure affine chain -> ONE matmul + bias
    #     (top-BN scale/shift folded in as well) ---
    A1r = pad_rc(p['r_W1'] * q1[:, None], CP, CP)
    c1r = pad_rc((p['r_b1'] * q1 + g1).reshape(BCR, 1), CP, 1)
    A2r = pad_rc(p['r_W2'][:, :, 0] * q2[:, None], CP, CP)
    c2r = pad_rc((p['r_b2'] * q2 + g2).reshape(BCR, 1), CP, 1)
    A3r = pad_rc(p['r_W3'] * q3[:, None], CP, CP)
    c3r = (p['r_b3'] * q3 + g3).reshape(CP, 1)
    Mr = jnp.dot(A3r, jnp.dot(A2r, A1r)) + pad_rc(p['r_Wres'], CP, CP)
    cr = jnp.dot(A3r, jnp.dot(A2r, c1r) + c2r) + c3r + p['r_bres'].reshape(CP, 1)
    res_m = ts_[:, None] * Mr
    res_c = ts_.reshape(CP, 1) * cr + th_.reshape(CP, 1)

    # --- constant structural matrices (block-diag expansion + temporal shifts) ---
    tileL = jnp.kron(jnp.ones((T, 1), f32), jnp.eye(V, dtype=f32))           # (128, 16)
    tileR = jnp.kron(jnp.ones((1, T), f32), jnp.eye(V, dtype=f32))           # (16, 128)
    blkmask = jnp.kron(jnp.eye(T, dtype=f32), jnp.ones((V, V), f32))         # (128, 128)
    sfw = jnp.eye(TV, k=-V, dtype=f32)       # x @ sfw : temporal shift +1 (zero fill)
    sbw = jnp.eye(TV, k=V, dtype=f32)        # x @ sbw : temporal shift -1 (zero fill)
    aux = jnp.concatenate(
        [blkmask, sfw, sbw,
         jnp.pad(tileR, ((0, TV - V), (0, 0))),
         jnp.pad(tileL, ((0, 0), (0, TV - V)))], axis=1)                     # (128, 640)

    # --- pack the remaining small weights into one slab; matrices first (8-aligned lanes) ---
    entries = [
        ('w23',   w23),                          # lanes [0, 72)
        ('t1_w',  t1_w),                         # [72, 80)
        ('gdn_w', gdn_w),                        # [80, 88)
        ('res_m', res_m),                        # [88, 96)
        ('eca_w', eca_band(p['eca_w'])),         # [96, 104)
        ('g_b',   g_b),
        ('t1_b',  t1_b),
        ('b23',   b23),
        ('res_c', res_c),
        ('eca_b', jnp.full((CP, 1), p['eca_b'], f32)),
    ]
    cols, sl, off = [], {}, 0
    for name, arr in entries:
        cols.append(jnp.asarray(arr, f32))
        sl[name] = (off, arr.shape[1])
        off += arr.shape[1]
    pack = jnp.concatenate(cols, axis=1)                                     # (8, 109)

    # -------------------------------- kernel ---------------------------------
    def kernel(xld_ref, xvct_ref, xctv_ref, waT_ref, wb_ref, apa_ref, wd_ref,
               aux_ref, pk_ref, o_ref):
        x_ld = xld_ref[0]               # (8, 128)  channels 4..7 are zero-padded
        x_vct = xvct_ref[0]             # (16, 32)
        x_ctv = xctv_ref[0]             # (32, 16)

        def P(name):
            o, w = sl[name]
            return pk_ref[:, o:o + w]

        bm = aux_ref[:, 0:TV]                      # (128, 128) block-diag mask
        sfw_m = aux_ref[:, TV:2 * TV]              # temporal shift +1
        sbw_m = aux_ref[:, 2 * TV:3 * TV]          # temporal shift -1
        tr = aux_ref[0:V, 3 * TV:4 * TV]           # (16, 128)
        tl = aux_ref[:, 4 * TV:4 * TV + V]         # (128, 16)

        # ------------------------------ unit_gcn ------------------------------
        # all three subsets' conv_a / conv_b / conv_d projections in one matmul each
        faT = jnp.dot(x_vct, waT_ref[:CT, :], preferred_element_type=jnp.float32) \
            + waT_ref[CT:CT + 1, :]                                          # (16, 48), /(IC*T) folded
        fb = jnp.dot(wb_ref[:, :CT], x_ctv, preferred_element_type=jnp.float32) \
            + wb_ref[:, CT:CT + 1]                                           # (48, 16)
        xd = jnp.dot(wd_ref[...], x_ld, preferred_element_type=jnp.float32)  # (24, 128), gcn-BN scale folded

        # start from the down path + all merged gcn biases
        acc = jnp.dot(P('gdn_w'), x_ld, preferred_element_type=jnp.float32) + P('g_b')
        for i in range(NSUB):
            mpre = jnp.dot(faT[:, i * ICT:(i + 1) * ICT], fb[i * ICT:(i + 1) * ICT, :],
                           preferred_element_type=jnp.float32)               # (V, V)
            mpre = mpre - jnp.max(mpre, axis=0, keepdims=True)               # softmax over dim -2
            e = jnp.exp(mpre)
            a1 = e * pl.reciprocal(jnp.sum(e, axis=0, keepdims=True), approx=True) + apa_ref[i]
            # block-diagonal expansion of a1 over the T*V lane axis (matmuls only)
            bd = jnp.dot(tl, jnp.dot(a1, tr, preferred_element_type=jnp.float32),
                         preferred_element_type=jnp.float32) * bm            # (128, 128)
            acc = acc + jnp.dot(xd[i * COUT:(i + 1) * COUT, :], bd,
                                preferred_element_type=jnp.float32)
        y = jnp.maximum(acc, 0.0)                                            # (8, 128)

        # -------- tcn1: 1x1 -> 9x1 temporal conv (conv3/bn3 + top-BN pre-folded) --------
        t1 = jnp.dot(P('t1_w'), y, preferred_element_type=jnp.float32) + P('t1_b')
        fw = [t1]
        bw = [t1]
        for _ in range(4):
            fw.append(jnp.dot(fw[-1], sfw_m, preferred_element_type=jnp.float32))
            bw.append(jnp.dot(bw[-1], sbw_m, preferred_element_type=jnp.float32))
        # stack the 9 taps (d = k - 4) and consume them with a single MXU matmul
        taps = jnp.concatenate(
            [bw[4], bw[3], bw[2], bw[1], t1, fw[1], fw[2], fw[3], fw[4]], axis=0)   # (72, 128)
        tout = jnp.dot(P('w23'), taps, preferred_element_type=jnp.float32) + P('b23')

        # ------------- residual: unit_tcn(CIN, COUT, k=1) folded to one affine -------------
        rout = jnp.dot(P('res_m'), x_ld, preferred_element_type=jnp.float32) + P('res_c')

        u = tout + rout                                                      # == top BN(tcn1 + residual)

        # -------- ECA: lane mean -> conv1d(k=3) over channels -> sigmoid ------
        cm = jnp.mean(u, axis=1, keepdims=True)                              # (8, 1)
        att = jax.nn.sigmoid(jnp.dot(P('eca_w'), cm, preferred_element_type=jnp.float32)
                             + P('eca_b'))
        o_ref[0] = jnp.maximum(u * att, 0.0)                                 # final ReLU

    # ------------------------------ pallas_call -------------------------------
    def bspec(a):
        return pl.BlockSpec((1,) + a.shape[1:],
                            lambda n, _nd=a.ndim: (n,) + (0,) * (_nd - 1))

    def wspec(a):
        return pl.BlockSpec(a.shape, lambda n, _nd=a.ndim: (0,) * _nd)

    weights = [waT_p, wb_p, apa, wd_stack, aux, pack]
    out = pl.pallas_call(
        kernel,
        out_shape=jax.ShapeDtypeStruct((N, COUT, TV), f32),
        grid=(N,),
        in_specs=[bspec(x_ld), bspec(x_vct), bspec(x_ctv)] + [wspec(a) for a in weights],
        out_specs=pl.BlockSpec((1, COUT, TV), lambda n: (n, 0, 0)),
        compiler_params=pltpu.CompilerParams(dimension_semantics=("parallel",)),
    )(x_ld, x_vct, x_ctv, *weights)

    return out.reshape(N, COUT, T, V)


# -------------------- plain-JAX reference (NCHW, eval-mode BN) ----------------

def bn_eval_ref(x, bn):
    g, b, m, v = bn
    return (x - m[None, :, None, None]) * (g / jnp.sqrt(v + EPS))[None, :, None, None] \
        + b[None, :, None, None]


def conv1x1_ref(x, W, b):
    return jnp.einsum('oc,nctv->notv', W, x) + b[None, :, None, None]


def tconv_ref(x, W, b, pad):
    Tt = x.shape[2]
    K = W.shape[2]
    xp = jnp.pad(x, ((0, 0), (0, 0), (pad, pad), (0, 0)))
    out = b[None, :, None, None]
    for k in range(K):
        out = out + jnp.einsum('oc,nctv->notv', W[:, :, k], xp[:, :, k:k + Tt, :])
    return out


def gcn_ref(x, p):
    Nn, Cc, Tt, Vv = x.shape
    A = p['A'] + p['PA']
    y = 0.0
    for i in range(NSUB):
        fa = conv1x1_ref(x, p['Wa'][i], p['ba'][i])
        fb = conv1x1_ref(x, p['Wb'][i], p['bb'][i])
        A1 = jnp.transpose(fa, (0, 3, 1, 2)).reshape(Nn, Vv, IC * Tt)
        A2 = fb.reshape(Nn, IC * Tt, Vv)
        M = jax.nn.softmax(jnp.matmul(A1, A2) / (IC * Tt), axis=-2) + A[i]
        g = jnp.matmul(x.reshape(Nn, Cc * Tt, Vv), M).reshape(Nn, Cc, Tt, Vv)
        y = y + conv1x1_ref(g, p['Wd'][i], p['bd'][i])
    y = bn_eval_ref(y, p['gcn_bn'])
    dn = bn_eval_ref(conv1x1_ref(x, p['Wdown'], p['bdown']), p['down_bn'])
    return jax.nn.relu(y + dn)


def unit_tcn_ref(x, W1, b1, bn1, W2, b2, bn2, W3, b3, bn3, ksize, res):
    pad = (ksize - 1) // 2
    h = bn_eval_ref(conv1x1_ref(x, W1, b1), bn1)
    h = bn_eval_ref(tconv_ref(h, W2, b2, pad), bn2)
    h = bn_eval_ref(conv1x1_ref(h, W3, b3), bn3)
    return h + res


def forward_ref(x, p):
    g = gcn_ref(x, p)
    t = unit_tcn_ref(g, p['t_W1'], p['t_b1'], p['t_bn1'], p['t_W2'], p['t_b2'], p['t_bn2'],
                     p['t_W3'], p['t_b3'], p['t_bn3'], 9, 0.0)
    res_inner = conv1x1_ref(x, p['r_Wres'], p['r_bres'])
    r = unit_tcn_ref(x, p['r_W1'], p['r_b1'], p['r_bn1'], p['r_W2'], p['r_b2'], p['r_bn2'],
                     p['r_W3'], p['r_b3'], p['r_bn3'], 1, res_inner)
    u = bn_eval_ref(t + r, p['top_bn'])
    # ECA
    m = jnp.mean(u, axis=(2, 3))
    mp = jnp.pad(m, ((0, 0), (1, 1)))
    w = p['eca_w']
    a = w[0] * mp[:, 0:COUT] + w[1] * mp[:, 1:COUT + 1] + w[2] * mp[:, 2:COUT + 2] + p['eca_b']
    a = jax.nn.sigmoid(a)
    return jax.nn.relu(u * a[:, :, None, None])


# ----------------------------------- main ------------------------------------

if __name__ == "__main__":
    params = make_params(0)
    x = jax.random.normal(jax.random.PRNGKey(0), (N_BATCH, CIN, T, V), dtype=jnp.float32)

    out = tcn_gcn_unit_forward(x, params)
    out = jax.block_until_ready(out)

    with jax.default_matmul_precision("highest"):
        ref = forward_ref(x, params)
    ref = jax.block_until_ready(ref)

    np.testing.assert_allclose(np.asarray(out), np.asarray(ref), rtol=2e-2, atol=2e-2)
    print("KERNEL_OK")
</pallas_src>

<mosaic_0001>
module attributes {stable_mosaic.version = 11 : i64} {
  func.func @kernel(%arg0: i32, %arg1: memref<1x8x128xf32, #tpu.memory_space<vmem>>, %arg2: memref<1x16x32xf32, #tpu.memory_space<vmem>>, %arg3: memref<1x32x16xf32, #tpu.memory_space<vmem>>, %arg4: memref<33x48xf32, #tpu.memory_space<vmem>>, %arg5: memref<48x33xf32, #tpu.memory_space<vmem>>, %arg6: memref<3x16x16xf32, #tpu.memory_space<vmem>>, %arg7: memref<24x8xf32, #tpu.memory_space<vmem>>, %arg8: memref<128x640xf32, #tpu.memory_space<vmem>>, %arg9: memref<8x109xf32, #tpu.memory_space<vmem>>, %arg10: memref<1x8x128xf32, #tpu.memory_space<vmem>>) attributes {dimension_semantics = [#tpu.dimension_semantics<parallel>], iteration_bounds = array<i64: 2>, scalar_prefetch = 0 : i64, scratch_operands = 0 : i64, tpu.core_type = #tpu.core_type<tc>, window_params = [{transform_indices = @transform_0, window_bounds = array<i64: 1, 8, 128>}, {transform_indices = @transform_1, window_bounds = array<i64: 1, 16, 32>}, {transform_indices = @transform_2, window_bounds = array<i64: 1, 32, 16>}, {pipeline_mode = #tpu.pipeline_mode<synchronous>, transform_indices = @transform_3, window_bounds = array<i64: 33, 48>}, {pipeline_mode = #tpu.pipeline_mode<synchronous>, transform_indices = @transform_4, window_bounds = array<i64: 48, 33>}, {pipeline_mode = #tpu.pipeline_mode<synchronous>, transform_indices = @transform_5, window_bounds = array<i64: 3, 16, 16>}, {pipeline_mode = #tpu.pipeline_mode<synchronous>, transform_indices = @transform_6, window_bounds = array<i64: 24, 8>}, {pipeline_mode = #tpu.pipeline_mode<synchronous>, transform_indices = @transform_7, window_bounds = array<i64: 128, 640>}, {pipeline_mode = #tpu.pipeline_mode<synchronous>, transform_indices = @transform_8, window_bounds = array<i64: 8, 109>}, {transform_indices = @transform_9, window_bounds = array<i64: 1, 8, 128>}]} {
    %c0 = arith.constant 0 : index
    %c0_0 = arith.constant 0 : index
    %c0_1 = arith.constant 0 : index
    %0 = vector.load %arg1[%c0, %c0_0, %c0_1] : memref<1x8x128xf32, #tpu.memory_space<vmem>>, vector<1x8x128xf32>
    %1 = vector.shape_cast %0 : vector<1x8x128xf32> to vector<8x128xf32>
    %c0_2 = arith.constant 0 : index
    %c0_3 = arith.constant 0 : index
    %c0_4 = arith.constant 0 : index
    %2 = vector.load %arg2[%c0_2, %c0_3, %c0_4] : memref<1x16x32xf32, #tpu.memory_space<vmem>>, vector<1x16x32xf32>
    %3 = vector.shape_cast %2 : vector<1x16x32xf32> to vector<16x32xf32>
    %c0_5 = arith.constant 0 : index
    %c0_6 = arith.constant 0 : index
    %c0_7 = arith.constant 0 : index
    %4 = vector.load %arg3[%c0_5, %c0_6, %c0_7] : memref<1x32x16xf32, #tpu.memory_space<vmem>>, vector<1x32x16xf32>
    %5 = vector.shape_cast %4 : vector<1x32x16xf32> to vector<32x16xf32>
    %c0_8 = arith.constant 0 : index
    %c0_9 = arith.constant 0 : index
    %6 = vector.load %arg8[%c0_8, %c0_9] : memref<128x640xf32, #tpu.memory_space<vmem>>, vector<128x128xf32>
    %c0_10 = arith.constant 0 : index
    %c128 = arith.constant 128 : index
    %7 = vector.load %arg8[%c0_10, %c128] : memref<128x640xf32, #tpu.memory_space<vmem>>, vector<128x128xf32>
    %c0_11 = arith.constant 0 : index
    %c256 = arith.constant 256 : index
    %8 = vector.load %arg8[%c0_11, %c256] : memref<128x640xf32, #tpu.memory_space<vmem>>, vector<128x128xf32>
    %c0_12 = arith.constant 0 : index
    %c384 = arith.constant 384 : index
    %9 = vector.load %arg8[%c0_12, %c384] : memref<128x640xf32, #tpu.memory_space<vmem>>, vector<16x128xf32>
    %c0_13 = arith.constant 0 : index
    %c512 = arith.constant 512 : index
    %10 = vector.load %arg8[%c0_13, %c512] : memref<128x640xf32, #tpu.memory_space<vmem>>, vector<128x16xf32>
    %c0_14 = arith.constant 0 : index
    %c0_15 = arith.constant 0 : index
    %11 = vector.load %arg4[%c0_14, %c0_15] : memref<33x48xf32, #tpu.memory_space<vmem>>, vector<32x48xf32>
    %cst = arith.constant dense<0.000000e+00> : vector<16x48xf32>
    %12 = tpu.matmul %3, %11, %cst {dimension_numbers = #tpu.dot_dimension_numbers<[1], [0], [0], [1], [0, 0, 1, 1], [], []>} : vector<16x32xf32>, vector<32x48xf32>, vector<16x48xf32> -> vector<16x48xf32>
    %c32 = arith.constant 32 : index
    %c0_16 = arith.constant 0 : index
    %13 = vector.load %arg4[%c32, %c0_16] : memref<33x48xf32, #tpu.memory_space<vmem>>, vector<1x48xf32>
    %14 = vector.broadcast %13 : vector<1x48xf32> to vector<16x48xf32>
    %15 = arith.addf %12, %14 : vector<16x48xf32>
    %c0_17 = arith.constant 0 : index
    %c0_18 = arith.constant 0 : index
    %16 = vector.load %arg5[%c0_17, %c0_18] : memref<48x33xf32, #tpu.memory_space<vmem>>, vector<48x32xf32>
    %cst_19 = arith.constant dense<0.000000e+00> : vector<48x16xf32>
    %17 = tpu.matmul %16, %5, %cst_19 {dimension_numbers = #tpu.dot_dimension_numbers<[1], [0], [0], [1], [0, 0, 1, 1], [], []>} : vector<48x32xf32>, vector<32x16xf32>, vector<48x16xf32> -> vector<48x16xf32>
    %c0_20 = arith.constant 0 : index
    %c32_21 = arith.constant 32 : index
    %18 = vector.load %arg5[%c0_20, %c32_21] : memref<48x33xf32, #tpu.memory_space<vmem>>, vector<48x1xf32>
    %19 = vector.broadcast %18 : vector<48x1xf32> to vector<48x16xf32>
    %20 = arith.addf %17, %19 : vector<48x16xf32>
    %c0_22 = arith.constant 0 : index
    %c0_23 = arith.constant 0 : index
    %21 = vector.load %arg7[%c0_22, %c0_23] : memref<24x8xf32, #tpu.memory_space<vmem>>, vector<24x8xf32>
    %cst_24 = arith.constant dense<0.000000e+00> : vector<24x128xf32>
    %22 = tpu.matmul %21, %1, %cst_24 {dimension_numbers = #tpu.dot_dimension_numbers<[1], [0], [0], [1], [0, 0, 1, 1], [], []>} : vector<24x8xf32>, vector<8x128xf32>, vector<24x128xf32> -> vector<24x128xf32>
    %c0_25 = arith.constant 0 : index
    %c80 = arith.constant 80 : index
    %23 = vector.load %arg9[%c0_25, %c80] : memref<8x109xf32, #tpu.memory_space<vmem>>, vector<8x8xf32>
    %cst_26 = arith.constant dense<0.000000e+00> : vector<8x128xf32>
    %24 = tpu.matmul %23, %1, %cst_26 {dimension_numbers = #tpu.dot_dimension_numbers<[1], [0], [0], [1], [0, 0, 1, 1], [], []>} : vector<8x8xf32>, vector<8x128xf32>, vector<8x128xf32> -> vector<8x128xf32>
    %c0_27 = arith.constant 0 : index
    %c104 = arith.constant 104 : index
    %25 = vector.load %arg9[%c0_27, %c104] : memref<8x109xf32, #tpu.memory_space<vmem>>, vector<8x1xf32>
    %26 = vector.broadcast %25 : vector<8x1xf32> to vector<8x128xf32>
    %27 = arith.addf %24, %26 : vector<8x128xf32>
    %28 = vector.extract_strided_slice %15 {offsets = [0, 0], sizes = [16, 16], strides = [1, 1]} : vector<16x48xf32> to vector<16x16xf32>
    %29 = vector.extract_strided_slice %20 {offsets = [0, 0], sizes = [16, 16], strides = [1, 1]} : vector<48x16xf32> to vector<16x16xf32>
    %cst_28 = arith.constant dense<0.000000e+00> : vector<16x16xf32>
    %30 = tpu.matmul %28, %29, %cst_28 {dimension_numbers = #tpu.dot_dimension_numbers<[1], [0], [0], [1], [0, 0, 1, 1], [], []>} : vector<16x16xf32>, vector<16x16xf32>, vector<16x16xf32> -> vector<16x16xf32>
    %cst_29 = arith.constant dense<0xFF800000> : vector<16xf32>
    %31 = vector.multi_reduction <maximumf>, %30, %cst_29 [0] : vector<16x16xf32> to vector<16xf32>
    %32 = vector.shape_cast %31 : vector<16xf32> to vector<1x16xf32>
    %33 = vector.broadcast %32 : vector<1x16xf32> to vector<16x16xf32>
    %34 = arith.subf %30, %33 : vector<16x16xf32>
    %35 = math.exp %34 : vector<16x16xf32>
    %cst_30 = arith.constant dense<0.000000e+00> : vector<16xf32>
    %36 = vector.multi_reduction <add>, %35, %cst_30 [0] : vector<16x16xf32> to vector<16xf32>
    %37 = vector.shape_cast %36 : vector<16xf32> to vector<1x16xf32>
    %38 = tpu.reciprocal %37 {approx = true} : vector<1x16xf32> -> vector<1x16xf32>
    %39 = vector.broadcast %38 : vector<1x16xf32> to vector<16x16xf32>
    %40 = arith.mulf %35, %39 : vector<16x16xf32>
    %c0_31 = arith.constant 0 : index
    %c0_32 = arith.constant 0 : index
    %c0_33 = arith.constant 0 : index
    %41 = vector.load %arg6[%c0_31, %c0_32, %c0_33] : memref<3x16x16xf32, #tpu.memory_space<vmem>>, vector<1x16x16xf32>
    %42 = vector.shape_cast %41 : vector<1x16x16xf32> to vector<16x16xf32>
    %43 = arith.addf %40, %42 : vector<16x16xf32>
    %cst_34 = arith.constant dense<0.000000e+00> : vector<16x128xf32>
    %44 = tpu.matmul %43, %9, %cst_34 {dimension_numbers = #tpu.dot_dimension_numbers<[1], [0], [0], [1], [0, 0, 1, 1], [], []>} : vector<16x16xf32>, vector<16x128xf32>, vector<16x128xf32> -> vector<16x128xf32>
    %cst_35 = arith.constant dense<0.000000e+00> : vector<128x128xf32>
    %45 = tpu.matmul %10, %44, %cst_35 {dimension_numbers = #tpu.dot_dimension_numbers<[1], [0], [0], [1], [0, 0, 1, 1], [], []>} : vector<128x16xf32>, vector<16x128xf32>, vector<128x128xf32> -> vector<128x128xf32>
    %46 = arith.mulf %45, %6 : vector<128x128xf32>
    %47 = vector.extract_strided_slice %22 {offsets = [0, 0], sizes = [8, 128], strides = [1, 1]} : vector<24x128xf32> to vector<8x128xf32>
    %cst_36 = arith.constant dense<0.000000e+00> : vector<8x128xf32>
    %48 = tpu.matmul %47, %46, %cst_36 {dimension_numbers = #tpu.dot_dimension_numbers<[1], [0], [0], [1], [0, 0, 1, 1], [], []>} : vector<8x128xf32>, vector<128x128xf32>, vector<8x128xf32> -> vector<8x128xf32>
    %49 = arith.addf %27, %48 : vector<8x128xf32>
    %50 = vector.extract_strided_slice %15 {offsets = [0, 16], sizes = [16, 16], strides = [1, 1]} : vector<16x48xf32> to vector<16x16xf32>
    %51 = vector.extract_strided_slice %20 {offsets = [16, 0], sizes = [16, 16], strides = [1, 1]} : vector<48x16xf32> to vector<16x16xf32>
    %cst_37 = arith.constant dense<0.000000e+00> : vector<16x16xf32>
    %52 = tpu.matmul %50, %51, %cst_37 {dimension_numbers = #tpu.dot_dimension_numbers<[1], [0], [0], [1], [0, 0, 1, 1], [], []>} : vector<16x16xf32>, vector<16x16xf32>, vector<16x16xf32> -> vector<16x16xf32>
    %cst_38 = arith.constant dense<0xFF800000> : vector<16xf32>
    %53 = vector.multi_reduction <maximumf>, %52, %cst_38 [0] : vector<16x16xf32> to vector<16xf32>
    %54 = vector.shape_cast %53 : vector<16xf32> to vector<1x16xf32>
    %55 = vector.broadcast %54 : vector<1x16xf32> to vector<16x16xf32>
    %56 = arith.subf %52, %55 : vector<16x16xf32>
    %57 = math.exp %56 : vector<16x16xf32>
    %cst_39 = arith.constant dense<0.000000e+00> : vector<16xf32>
    %58 = vector.multi_reduction <add>, %57, %cst_39 [0] : vector<16x16xf32> to vector<16xf32>
    %59 = vector.shape_cast %58 : vector<16xf32> to vector<1x16xf32>
    %60 = tpu.reciprocal %59 {approx = true} : vector<1x16xf32> -> vector<1x16xf32>
    %61 = vector.broadcast %60 : vector<1x16xf32> to vector<16x16xf32>
    %62 = arith.mulf %57, %61 : vector<16x16xf32>
    %c1 = arith.constant 1 : index
    %c0_40 = arith.constant 0 : index
    %c0_41 = arith.constant 0 : index
    %63 = vector.load %arg6[%c1, %c0_40, %c0_41] : memref<3x16x16xf32, #tpu.memory_space<vmem>>, vector<1x16x16xf32>
    %64 = vector.shape_cast %63 : vector<1x16x16xf32> to vector<16x16xf32>
    %65 = arith.addf %62, %64 : vector<16x16xf32>
    %cst_42 = arith.constant dense<0.000000e+00> : vector<16x128xf32>
    %66 = tpu.matmul %65, %9, %cst_42 {dimension_numbers = #tpu.dot_dimension_numbers<[1], [0], [0], [1], [0, 0, 1, 1], [], []>} : vector<16x16xf32>, vector<16x128xf32>, vector<16x128xf32> -> vector<16x128xf32>
    %cst_43 = arith.constant dense<0.000000e+00> : vector<128x128xf32>
    %67 = tpu.matmul %10, %66, %cst_43 {dimension_numbers = #tpu.dot_dimension_numbers<[1], [0], [0], [1], [0, 0, 1, 1], [], []>} : vector<128x16xf32>, vector<16x128xf32>, vector<128x128xf32> -> vector<128x128xf32>
    %68 = arith.mulf %67, %6 : vector<128x128xf32>
    %69 = vector.extract_strided_slice %22 {offsets = [8, 0], sizes = [8, 128], strides = [1, 1]} : vector<24x128xf32> to vector<8x128xf32>
    %cst_44 = arith.constant dense<0.000000e+00> : vector<8x128xf32>
    %70 = tpu.matmul %69, %68, %cst_44 {dimension_numbers = #tpu.dot_dimension_numbers<[1], [0], [0], [1], [0, 0, 1, 1], [], []>} : vector<8x128xf32>, vector<128x128xf32>, vector<8x128xf32> -> vector<8x128xf32>
    %71 = arith.addf %49, %70 : vector<8x128xf32>
    %72 = vector.extract_strided_slice %15 {offsets = [0, 32], sizes = [16, 16], strides = [1, 1]} : vector<16x48xf32> to vector<16x16xf32>
    %73 = vector.extract_strided_slice %20 {offsets = [32, 0], sizes = [16, 16], strides = [1, 1]} : vector<48x16xf32> to vector<16x16xf32>
    %cst_45 = arith.constant dense<0.000000e+00> : vector<16x16xf32>
    %74 = tpu.matmul %72, %73, %cst_45 {dimension_numbers = #tpu.dot_dimension_numbers<[1], [0], [0], [1], [0, 0, 1, 1], [], []>} : vector<16x16xf32>, vector<16x16xf32>, vector<16x16xf32> -> vector<16x16xf32>
    %cst_46 = arith.constant dense<0xFF800000> : vector<16xf32>
    %75 = vector.multi_reduction <maximumf>, %74, %cst_46 [0] : vector<16x16xf32> to vector<16xf32>
    %76 = vector.shape_cast %75 : vector<16xf32> to vector<1x16xf32>
    %77 = vector.broadcast %76 : vector<1x16xf32> to vector<16x16xf32>
    %78 = arith.subf %74, %77 : vector<16x16xf32>
    %79 = math.exp %78 : vector<16x16xf32>
    %cst_47 = arith.constant dense<0.000000e+00> : vector<16xf32>
    %80 = vector.multi_reduction <add>, %79, %cst_47 [0] : vector<16x16xf32> to vector<16xf32>
    %81 = vector.shape_cast %80 : vector<16xf32> to vector<1x16xf32>
    %82 = tpu.reciprocal %81 {approx = true} : vector<1x16xf32> -> vector<1x16xf32>
    %83 = vector.broadcast %82 : vector<1x16xf32> to vector<16x16xf32>
    %84 = arith.mulf %79, %83 : vector<16x16xf32>
    %c2 = arith.constant 2 : index
    %c0_48 = arith.constant 0 : index
    %c0_49 = arith.constant 0 : index
    %85 = vector.load %arg6[%c2, %c0_48, %c0_49] : memref<3x16x16xf32, #tpu.memory_space<vmem>>, vector<1x16x16xf32>
    %86 = vector.shape_cast %85 : vector<1x16x16xf32> to vector<16x16xf32>
    %87 = arith.addf %84, %86 : vector<16x16xf32>
    %cst_50 = arith.constant dense<0.000000e+00> : vector<16x128xf32>
    %88 = tpu.matmul %87, %9, %cst_50 {dimension_numbers = #tpu.dot_dimension_numbers<[1], [0], [0], [1], [0, 0, 1, 1], [], []>} : vector<16x16xf32>, vector<16x128xf32>, vector<16x128xf32> -> vector<16x128xf32>
    %cst_51 = arith.constant dense<0.000000e+00> : vector<128x128xf32>
    %89 = tpu.matmul %10, %88, %cst_51 {dimension_numbers = #tpu.dot_dimension_numbers<[1], [0], [0], [1], [0, 0, 1, 1], [], []>} : vector<128x16xf32>, vector<16x128xf32>, vector<128x128xf32> -> vector<128x128xf32>
    %90 = arith.mulf %89, %6 : vector<128x128xf32>
    %91 = vector.extract_strided_slice %22 {offsets = [16, 0], sizes = [8, 128], strides = [1, 1]} : vector<24x128xf32> to vector<8x128xf32>
    %cst_52 = arith.constant dense<0.000000e+00> : vector<8x128xf32>
    %92 = tpu.matmul %91, %90, %cst_52 {dimension_numbers = #tpu.dot_dimension_numbers<[1], [0], [0], [1], [0, 0, 1, 1], [], []>} : vector<8x128xf32>, vector<128x128xf32>, vector<8x128xf32> -> vector<8x128xf32>
    %93 = arith.addf %71, %92 : vector<8x128xf32>
    %cst_53 = arith.constant 0.000000e+00 : f32
    %94 = vector.broadcast %cst_53 : f32 to vector<8x128xf32>
    %95 = arith.maximumf %93, %94 : vector<8x128xf32>
    %c0_54 = arith.constant 0 : index
    %c72 = arith.constant 72 : index
    %96 = vector.load %arg9[%c0_54, %c72] : memref<8x109xf32, #tpu.memory_space<vmem>>, vector<8x8xf32>
    %cst_55 = arith.constant dense<0.000000e+00> : vector<8x128xf32>
    %97 = tpu.matmul %96, %95, %cst_55 {dimension_numbers = #tpu.dot_dimension_numbers<[1], [0], [0], [1], [0, 0, 1, 1], [], []>} : vector<8x8xf32>, vector<8x128xf32>, vector<8x128xf32> -> vector<8x128xf32>
    %c0_56 = arith.constant 0 : index
    %c105 = arith.constant 105 : index
    %98 = vector.load %arg9[%c0_56, %c105] : memref<8x109xf32, #tpu.memory_space<vmem>>, vector<8x1xf32>
    %99 = vector.broadcast %98 : vector<8x1xf32> to vector<8x128xf32>
    %100 = arith.addf %97, %99 : vector<8x128xf32>
    %cst_57 = arith.constant dense<0.000000e+00> : vector<8x128xf32>
    %101 = tpu.matmul %100, %7, %cst_57 {dimension_numbers = #tpu.dot_dimension_numbers<[1], [0], [0], [1], [0, 0, 1, 1], [], []>} : vector<8x128xf32>, vector<128x128xf32>, vector<8x128xf32> -> vector<8x128xf32>
    %cst_58 = arith.constant dense<0.000000e+00> : vector<8x128xf32>
    %102 = tpu.matmul %100, %8, %cst_58 {dimension_numbers = #tpu.dot_dimension_numbers<[1], [0], [0], [1], [0, 0, 1, 1], [], []>} : vector<8x128xf32>, vector<128x128xf32>, vector<8x128xf32> -> vector<8x128xf32>
    %cst_59 = arith.constant dense<0.000000e+00> : vector<8x128xf32>
    %103 = tpu.matmul %101, %7, %cst_59 {dimension_numbers = #tpu.dot_dimension_numbers<[1], [0], [0], [1], [0, 0, 1, 1], [], []>} : vector<8x128xf32>, vector<128x128xf32>, vector<8x128xf32> -> vector<8x128xf32>
    %cst_60 = arith.constant dense<0.000000e+00> : vector<8x128xf32>
    %104 = tpu.matmul %102, %8, %cst_60 {dimension_numbers = #tpu.dot_dimension_numbers<[1], [0], [0], [1], [0, 0, 1, 1], [], []>} : vector<8x128xf32>, vector<128x128xf32>, vector<8x128xf32> -> vector<8x128xf32>
    %cst_61 = arith.constant dense<0.000000e+00> : vector<8x128xf32>
    %105 = tpu.matmul %103, %7, %cst_61 {dimension_numbers = #tpu.dot_dimension_numbers<[1], [0], [0], [1], [0, 0, 1, 1], [], []>} : vector<8x128xf32>, vector<128x128xf32>, vector<8x128xf32> -> vector<8x128xf32>
    %cst_62 = arith.constant dense<0.000000e+00> : vector<8x128xf32>
    %106 = tpu.matmul %104, %8, %cst_62 {dimension_numbers = #tpu.dot_dimension_numbers<[1], [0], [0], [1], [0, 0, 1, 1], [], []>} : vector<8x128xf32>, vector<128x128xf32>, vector<8x128xf32> -> vector<8x128xf32>
    %cst_63 = arith.constant dense<0.000000e+00> : vector<8x128xf32>
    %107 = tpu.matmul %105, %7, %cst_63 {dimension_numbers = #tpu.dot_dimension_numbers<[1], [0], [0], [1], [0, 0, 1, 1], [], []>} : vector<8x128xf32>, vector<128x128xf32>, vector<8x128xf32> -> vector<8x128xf32>
    %cst_64 = arith.constant dense<0.000000e+00> : vector<8x128xf32>
    %108 = tpu.matmul %106, %8, %cst_64 {dimension_numbers = #tpu.dot_dimension_numbers<[1], [0], [0], [1], [0, 0, 1, 1], [], []>} : vector<8x128xf32>, vector<128x128xf32>, vector<8x128xf32> -> vector<8x128xf32>
    %109 = tpu.concatenate %108, %106, %104, %102, %100, %101, %103, %105, %107 in 0 : vector<8x128xf32>, vector<8x128xf32>, vector<8x128xf32>, vector<8x128xf32>, vector<8x128xf32>, vector<8x128xf32>, vector<8x128xf32>, vector<8x128xf32>, vector<8x128xf32> -> vector<72x128xf32>
    %c0_65 = arith.constant 0 : index
    %c0_66 = arith.constant 0 : index
    %110 = vector.load %arg9[%c0_65, %c0_66] : memref<8x109xf32, #tpu.memory_space<vmem>>, vector<8x72xf32>
    %cst_67 = arith.constant dense<0.000000e+00> : vector<8x128xf32>
    %111 = tpu.matmul %110, %109, %cst_67 {dimension_numbers = #tpu.dot_dimension_numbers<[1], [0], [0], [1], [0, 0, 1, 1], [], []>} : vector<8x72xf32>, vector<72x128xf32>, vector<8x128xf32> -> vector<8x128xf32>
    %c0_68 = arith.constant 0 : index
    %c106 = arith.constant 106 : index
    %112 = vector.load %arg9[%c0_68, %c106] : memref<8x109xf32, #tpu.memory_space<vmem>>, vector<8x1xf32>
    %113 = vector.broadcast %112 : vector<8x1xf32> to vector<8x128xf32>
    %114 = arith.addf %111, %113 : vector<8x128xf32>
    %c0_69 = arith.constant 0 : index
    %c88 = arith.constant 88 : index
    %115 = vector.load %arg9[%c0_69, %c88] : memref<8x109xf32, #tpu.memory_space<vmem>>, vector<8x8xf32>
    %cst_70 = arith.constant dense<0.000000e+00> : vector<8x128xf32>
    %116 = tpu.matmul %115, %1, %cst_70 {dimension_numbers = #tpu.dot_dimension_numbers<[1], [0], [0], [1], [0, 0, 1, 1], [], []>} : vector<8x8xf32>, vector<8x128xf32>, vector<8x128xf32> -> vector<8x128xf32>
    %c0_71 = arith.constant 0 : index
    %c107 = arith.constant 107 : index
    %117 = vector.load %arg9[%c0_71, %c107] : memref<8x109xf32, #tpu.memory_space<vmem>>, vector<8x1xf32>
    %118 = vector.broadcast %117 : vector<8x1xf32> to vector<8x128xf32>
    %119 = arith.addf %116, %118 : vector<8x128xf32>
    %120 = arith.addf %114, %119 : vector<8x128xf32>
    %cst_72 = arith.constant dense<0.000000e+00> : vector<8xf32>
    %121 = vector.multi_reduction <add>, %120, %cst_72 [1] : vector<8x128xf32> to vector<8xf32>
    %122 = vector.shape_cast %121 : vector<8xf32> to vector<8x1xf32>
    %cst_73 = arith.constant 1.280000e+02 : f32
    %123 = vector.broadcast %cst_73 : f32 to vector<8x1xf32>
    %124 = arith.divf %122, %123 : vector<8x1xf32>
    %c0_74 = arith.constant 0 : index
    %c96 = arith.constant 96 : index
    %125 = vector.load %arg9[%c0_74, %c96] : memref<8x109xf32, #tpu.memory_space<vmem>>, vector<8x8xf32>
    %cst_75 = arith.constant dense<0.000000e+00> : vector<8x1xf32>
    %126 = tpu.matmul %125, %124, %cst_75 {dimension_numbers = #tpu.dot_dimension_numbers<[1], [0], [0], [1], [0, 0, 1, 1], [], []>} : vector<8x8xf32>, vector<8x1xf32>, vector<8x1xf32> -> vector<8x1xf32>
    %c0_76 = arith.constant 0 : index
    %c108 = arith.constant 108 : index
    %127 = vector.load %arg9[%c0_76, %c108] : memref<8x109xf32, #tpu.memory_space<vmem>>, vector<8x1xf32>
    %128 = arith.addf %126, %127 : vector<8x1xf32>
    %129 = arith.negf %128 : vector<8x1xf32>
    %130 = math.exp %129 : vector<8x1xf32>
    %cst_77 = arith.constant 1.000000e+00 : f32
    %131 = vector.broadcast %cst_77 : f32 to vector<8x1xf32>
    %132 = arith.addf %131, %130 : vector<8x1xf32>
    %133 = arith.divf %131, %132 : vector<8x1xf32>
    %134 = vector.broadcast %133 : vector<8x1xf32> to vector<8x128xf32>
    %135 = arith.mulf %120, %134 : vector<8x128xf32>
    %cst_78 = arith.constant 0.000000e+00 : f32
    %136 = vector.broadcast %cst_78 : f32 to vector<8x128xf32>
    %137 = arith.maximumf %135, %136 : vector<8x128xf32>
    %c0_79 = arith.constant 0 : index
    %c0_80 = arith.constant 0 : index
    %c0_81 = arith.constant 0 : index
    %138 = vector.load %arg10[%c0_79, %c0_80, %c0_81] : memref<1x8x128xf32, #tpu.memory_space<vmem>>, vector<1x8x128xf32>
    %139 = vector.shape_cast %138 : vector<1x8x128xf32> to vector<8x128xf32>
    %140 = vector.shape_cast %137 : vector<8x128xf32> to vector<1x8x128xf32>
    tpu.vector_store %arg10[%c0_79, %c0_80, %c0_81], %140 {strides = array<i32>} : memref<1x8x128xf32, #tpu.memory_space<vmem>>, vector<1x8x128xf32>,
    return
  }
  func.func @transform_0(%arg0: i32) -> (i32, i32, i32) {
    %c0_i32 = arith.constant 0 : i32
    %c0_i32_0 = arith.constant 0 : i32
    %c0_i32_1 = arith.constant 0 : i32
    return %arg0, %c0_i32, %c0_i32_0 : i32, i32, i32
  }
  func.func @transform_1(%arg0: i32) -> (i32, i32, i32) {
    %c0_i32 = arith.constant 0 : i32
    %c0_i32_0 = arith.constant 0 : i32
    %c0_i32_1 = arith.constant 0 : i32
    return %arg0, %c0_i32, %c0_i32_0 : i32, i32, i32
  }
  func.func @transform_2(%arg0: i32) -> (i32, i32, i32) {
    %c0_i32 = arith.constant 0 : i32
    %c0_i32_0 = arith.constant 0 : i32
    %c0_i32_1 = arith.constant 0 : i32
    return %arg0, %c0_i32, %c0_i32_0 : i32, i32, i32
  }
  func.func @transform_3(%arg0: i32) -> (i32, i32) {
    %c0_i32 = arith.constant 0 : i32
    %c0_i32_0 = arith.constant 0 : i32
    %c0_i32_1 = arith.constant 0 : i32
    return %c0_i32, %c0_i32_0 : i32, i32
  }
  func.func @transform_4(%arg0: i32) -> (i32, i32) {
    %c0_i32 = arith.constant 0 : i32
    %c0_i32_0 = arith.constant 0 : i32
    %c0_i32_1 = arith.constant 0 : i32
    return %c0_i32, %c0_i32_0 : i32, i32
  }
  func.func @transform_5(%arg0: i32) -> (i32, i32, i32) {
    %c0_i32 = arith.constant 0 : i32
    %c0_i32_0 = arith.constant 0 : i32
    %c0_i32_1 = arith.constant 0 : i32
    %c0_i32_2 = arith.constant 0 : i32
    return %c0_i32, %c0_i32_0, %c0_i32_1 : i32, i32, i32
  }
  func.func @transform_6(%arg0: i32) -> (i32, i32) {
    %c0_i32 = arith.constant 0 : i32
    %c0_i32_0 = arith.constant 0 : i32
    %c0_i32_1 = arith.constant 0 : i32
    return %c0_i32, %c0_i32_0 : i32, i32
  }
  func.func @transform_7(%arg0: i32) -> (i32, i32) {
    %c0_i32 = arith.constant 0 : i32
    %c0_i32_0 = arith.constant 0 : i32
    %c0_i32_1 = arith.constant 0 : i32
    return %c0_i32, %c0_i32_0 : i32, i32
  }
  func.func @transform_8(%arg0: i32) -> (i32, i32) {
    %c0_i32 = arith.constant 0 : i32
    %c0_i32_0 = arith.constant 0 : i32
    %c0_i32_1 = arith.constant 0 : i32
    return %c0_i32, %c0_i32_0 : i32, i32
  }
  func.func @transform_9(%arg0: i32) -> (i32, i32, i32) {
    %c0_i32 = arith.constant 0 : i32
    %c0_i32_0 = arith.constant 0 : i32
    %c0_i32_1 = arith.constant 0 : i32
    return %arg0, %c0_i32, %c0_i32_0 : i32, i32, i32
  }
}

</mosaic_0001>

<bundles_post_ra>
// kernel: tpu_custom_call.1
= control target key start
LH: loop header
LB: loop body
LE: loop exit
PB: predicated region body
PF: predicated region fallthrough
CT: control target
= control target key end

     0   :  { %s5562_s0 = inlined_call_operand.vmem [shape: f32[2,8,128], index: 0, kind: input, shape index: {}]   ;;  %s5563_s1 = inlined_call_operand.vmem [shape: f32[2,16,32], index: 1, kind: input, shape index: {}]   ;;  %s5564_s2 = inlined_call_operand.vmem [shape: f32[2,32,16], index: 2, kind: input, shape index: {}]   ;;  %s5565_s3 = inlined_call_operand.vmem [shape: f32[33,48], index: 3, kind: input, shape index: {}]   ;;  %s5566_s4 = inlined_call_operand.vmem [shape: f32[48,33], index: 4, kind: input, shape index: {}]   ;;  %s5567_s5 = inlined_call_operand.vmem [shape: f32[3,16,16], index: 5, kind: input, shape index: {}]   ;;  %s5568_s6 = inlined_call_operand.vmem [shape: f32[24,8], index: 6, kind: input, shape index: {}]   ;;  %s5569_s7 = inlined_call_operand.hbm [shape: f32[128,640], index: 7, kind: input, shape index: {}]   ;;  %s5570_s8 = inlined_call_operand.vmem [shape: f32[8,109], index: 8, kind: input, shape index: {}]   ;;  %s5571_s9 = inlined_call_operand.hbm [shape: f32[2,8,128], index: 9, kind: output, shape index: {}]  }
   0x1   :  { %5580 = sst [smem:[#allocation11_spill]] %s5569_s7 }
   0x2   :  { %14 = vsyncpa [#allocation3], 0 }
   0x3   :  { %15 = vsyncpa [#allocation4], 0 }
   0x4   :  { %17 = vsyncpa [#allocation4 + $0x1], 0  ;;  %s4787_s30 = smov 0   ;;  %s4789_s10 = smov 0  }
   0x5   :  { %s4791_s11 = smov 0   ;;  %s4793_s12 = smov 0  }
   0x6 LB: > { %5581 = sst [smem:[#allocation8_spill]] %s4711_s11  ;;  %s4808_s13 = sadd.s32 4294967295, %s4715_s12   ;;  %s4715_s12 = sphi %s4793_s12, %s5595_s12   ;;  %s4711_s11 = sphi %s4791_s11, %s5597_s11   ;;  %s4707_s10 = sphi %s4789_s10, %s5599_s10   ;;  %s4703_s30 = sphi %s4787_s30, %s5598_s30  }
   0x7   : > { %s3192_s14 = sadd.s32 4294967294, %s4715_s12   ;;  %s4812_s15 = sadd.s32 1, %s4715_s12  }
   0x8   : > { %5582 = sst [smem:[#allocation9_spill]] %s4812_s15  ;;  %s234_s16 = sadd.s32 1, %s4711_s11 }
   0x9   : > { %s231_s17 = ssub.s32 %s4715_s12, %s4812_s15  ;;  %p244_p0 = scmp.ne.s32.totalorder %s4711_s11, %s4707_s10 }
   0xa   : > { %p232_p1 = scmp.eq.s32.totalorder %s231_s17, 0  ;;  %p245_p2 = scmp.eq.s32.totalorder %s4808_s13, 1 }
   0xb   : > { %p250_p3 = scmp.ne.s32.totalorder %s4707_s10, %s4703_s30  ;;  %p251_p4 = scmp.eq.s32.totalorder %s3192_s14, 1 }
   0xc   : > { %s4823_s18 = scalar_select %p232_p1, %s4711_s11, %s234_s16  }
   0xd   : > { %p4825_p5 = por %p245_p2, %p244_p0  ;;  %p4829_p6 = por %p251_p4, %p250_p3 }
   0xe   : > { %5583 = sst [smem:[#allocation10_spill]] %s4823_s18  ;;  %p3193_p7 = scmp.ge.s32.totalorder %s4715_s12, 1 }
   0xf   : > { %s5584_s19 = scalar_select %p4825_p5, 1, 0 }
  0x10   : > { %s5585_s20 = scalar_select %p4829_p6, 1, 0 }
  0x11   : > { %p258_p8 = scmp.lt.s32.totalorder %s4715_s12, 3  ;;  %p5572_p9 = scmp.eq.s32.totalorder %s4808_s13, 0 }
  0x12   : > { %s4717_s22 = smov [#allocation2]   ;;  %s5588_s7 = sld [smem:[#allocation11_spill]] }
  0x13   : > { %p4836_p10 = pnand %p3193_p7, %p258_p8  ;;  %s282_s23 = sshll.u32 %s4717_s22, 4  ;;  %s283_s23 = int_to_ptr.vmem [resolvable:$true] %s282_s23 }
  0x15   : > { %s5586_s21 = scalar_select %p4836_p10, 1, 0 }
  0x16   : > { %p4528_p11 = pneg %p4836_p10 }
  0x18   : > { %p4844_p12 = pnand %p5572_p9, %p4528_p11  ;;  %s4621_s27 = scalar_lea.hbm %s5588_s7, 10240 }
  0x19   : > { %p4622_p13 = scmp.ne.s32.totalorder %s5588_s7, %s4621_s27  ;;  %p4628_p3 = scmp.lt.u32.totalorder %s4621_s27, %s5588_s7 }
  0x1a   : > { %p4623_p0 = pneg %p4844_p12 }
  0x1c   : > { %p4624_p1 = pnand %p4623_p0, %p4622_p13 }
  0x1e   : > { %p4625_p2 = pneg %p4624_p1 }
  0x20   : > { %p4630_p4 = pnand %p4628_p3, %p4625_p2 }
  0x22   : > { %4633 = shalt.err (!%p4630_p4)
}
  0x23   : > { %s4634_s17 = scalar_lea.vmem %s283_s23, 10240  ;;  %p4642_p9 = scmp.lt.s32.totalorder %s283_s23, %s283_s23 }
  0x24   : > { %p4635_p7 = scmp.ne.s32.totalorder %s283_s23, %s4634_s17  ;;  %p4643_p6 = scmp.lt.s32.totalorder %s4634_s17, %s4634_s17 }
  0x26   : > { %p4637_p8 = pnand %p4635_p7, %p4623_p0  ;;  %p4644_p5 = por %p4643_p6, %p4642_p9 }
  0x28   : > { %p4638_p11 = pneg %p4637_p8 }
  0x2a   : > { %p4645_p10 = pnand %p4644_p5, %p4638_p11 }
  0x2c   : > { %4648 = shalt.err (!%p4645_p10)
}
  0x2d   : > { %s4718_s22 = smov 640   ;;  %s4719_s25 = smov 40  }
  0x2e   : > { %4531 = dma.hbm_to_vmem [thread:$0]  (!%p4844_p12), %s5588_s7, 10240, %s283_s23, [#allocation3], %s4718_s22, %s4718_s22, %s4719_s25  }
  0x2f   : > { %p5589_p13 = scmp.ne.s32.totalorder %s5586_s21, 0 }
  0x30   : > { %p5590_p1 = scmp.eq.s32.totalorder (!%p5589_p13), %s4808_s13, 0 }
  0x31   : > { %324 = sbr.rel (%p5589_p13) target bundleno = 4308 (0x10d4), region = 56 }
  0x38   : > { %4694 = dma.done.wait (%p5590_p1), [#allocation3], 10240   ;;  %p5591_p0 = pmov %p5590_p1 }
  0x39   : > { %p369_p5 = scmp.lt.s32.totalorder %s4808_s13, 1  ;;  %v4720_v0 = vmov 32   ;;  %v5578_v1 = vmov 0.0   ;;  %vm4722_vm0 = vmmov 0   ;;  %vm465_vm1 = vcmask 261120   ;;  %v456_v2 = vld [vmem:[%s5565_s3] sm:$0xff] }
  0x3a   : > { %4696 = vsyncadd (%p5591_p0), [#allocation3], 4294957056  ;;  %4590 = vset.pattern.permute.xlu0 %v4720_v0  ;;  %4591 = vset.pattern.permute.xlu1 %v4720_v0  ;;  %v457_v3 = vld [vmem:[%s5565_s3 + $0x8] sm:$0xff]  ;;  %v458_v4 = vld [vmem:[%s5565_s3 + $0x10] sm:$0xff]  ;;  %vm693_vm2 = vcmask 64512   ;;  %s4723_s16 = smov 48  }
  0x3b   : > { %s370_s24 = scalar_select %p369_p5, %s4808_s13, 1  ;;  %3623 = vmatprep.subr.mxu0 %v5578_v1  ;;  %3625 = vmatprep.mubr.msk.f32.mxu0 %vm4722_vm0, %v5578_v1  ;;  %v4186_v5 = vpack.c.bf16 %v457_v3, %v456_v2  ;;  %v459_v6 = vld [vmem:[%s5565_s3 + $0x18] sm:$0xff]  ;;  %v547_v11 = vld [vmem:[%s5566_s4] sm:$0xff]  ;;  %v548_v18 = vld [vmem:[%s5566_s4 + $0x8] sm:$0xff]  ;;  %vm863_vm3 = vcmask 130048   ;;  %v4726_v3 = vmov 104  }
  0x3c   : > { %v4190_v8 = vpack.c.bf16 %v459_v6, %v458_v4  ;;  %555 = vperm.xlu0 %4590, %v547_v11   ;;  %v4908_v12 = vld [vmem:[%s5570_s8] sm:$0xff]  ;;  %v549_v20 = vld [vmem:[%s5566_s4 + $0x10] sm:$0xff]  ;;  %v691_v21 = vld [vmem:[%s5568_s6 + $0x8] sm:$0xff]  ;;  %s4724_s28 = smov 112   ;;  %s4728_s26 = smov 56   ;;  %vm2836_vm4 = vcmask 588800  }
  0x3d   : > { %s3290_s21 = sshll.u32 %s370_s24, 4  ;;  %s3291_s23 = sshll.u32 %s370_s24, 5  ;;  %4187 = vmatprep.subr.bf16.mxu1 %v4186_v5  ;;  %789 = vrot.lane.b32.xlu1 %v4908_v12, %s4723_s16  ;;  %v690_v17 = vld [vmem:[%s5568_s6] sm:$0xff]  ;;  %v550_v23 = vld [vmem:[%s5566_s4 + $0x18] sm:$0xff]  ;;  %v552_v25 = vld [vmem:[%s5566_s4 + $0x28] sm:$0xff] }
  0x3e   : > { %s4878_s14 = scalar_lea.vmem %s5563_s1, %s3290_s21  ;;  %s382_s22 = scalar_lea.vmem %s5564_s2, %s3291_s23  ;;  %4189 = vmatpush3.bf16.msra.mxu1 %v4186_v5  ;;  %v551_v24 = vld [vmem:[%s5566_s4 + $0x20] sm:$0xff]  ;;  %v692_v26 = vld [vmem:[%s5568_s6 + $0x10] sm:$0xff]  ;;  %v438_v62 = vld [vmem:[#allocation2 + $0x18] sm:$0xff] }
  0x3f   : > { %s3199_s25 = sshll.u32 %s370_s24, 3  ;;  %v384_v7 = vld [vmem:[%s4878_s14] sm:$0xff]  ;;  %v387_v10 = vld [vmem:[%s382_s22 + $0x8] sm:$0xff]  ;;  %4191 = vmatprep.subr.bf16.mxu1 %v4190_v8  ;;  %v388_v15 = vld [vmem:[%s382_s22 + $0x10] sm:$0xff]  ;;  %s4725_s21 = smov 96  }
  0x40   : > { %3603 = vmatprep.mubr.msk.f32.mxu1 %vm465_vm1, %v384_v7  ;;  %v386_v9 = vld [vmem:[%s382_s22] sm:$0xff]  ;;  %s4900_s7 = scalar_lea.vmem %s5562_s0, %s3199_s25  ;;  %v389_v16 = vld [vmem:[%s382_s22 + $0x18] sm:$0xff]  ;;  %v385_v19 = vld [vmem:[%s4878_s14 + $0x8] sm:$0xff]  ;;  %560 = vperm.xlu0 %4590, %v548_v18   ;;  %s4730_s27 = smov 40  }
  0x41   : > { %v4194_v13 = vpack.c.bf16 %v387_v10, %v386_v9  ;;  %v383_v14 = vld [vmem:[%s4900_s7] sm:$0xff]  ;;  %v4198_v22 = vpack.c.bf16 %v389_v16, %v388_v15  ;;  %565 = vperm.xlu1 %4591, %v549_v20   ;;  %s4733_s24 = smov 32   ;;  %s4734_s22 = smov 20  }
  0x42   : > { %3624 = vmatpush3.msra.mxu0 %v383_v14  ;;  %4193 = vmatpush3.bf16.msra.mxu1 %v4190_v8  ;;  %v3204_v28 = vld [vmem:[%s5565_s3 + $0x20] ss:$0 sm:$0xff]  ;;  %s3287_s23 = sshll.u32 %s4808_s13, 7  ;;  %p5593_p9 = scmp.ne.s32.totalorder %s5584_s19, 0 }
  0x43   : > { %3626 = vmatmul.mubr.msk.f32.vlgmr.msra.gmra.mrb[0].mxu0 %vm693_vm2, %v690_v17  ;;  %4195 = vmatprep.subr.bf16.mxu1 %v4194_v13  ;;  %v439_v63 = vld [vmem:[#allocation2 + $0x40] sm:$0xff]  ;;  %s5520_s16 = scalar_lea.hbm %s5571_s9, %s3287_s23  ;;  %s4736_s13 = smov [#allocation5]  }
  0x44   : > { %3628 = vmatprep.mubr.msk.f32.mxu0 %vm4722_vm0, %v5578_v1  ;;  %570 = vperm.xlu0 %4590, %v550_v23   ;;  %v4974_v0 = vpack.c.bf16 %v439_v63, %v438_v62  ;;  %v5047_v62 = vld [vmem:[#allocation2 + $0x228] sm:$0xff]  ;;  %v5049_v63 = vld [vmem:[#allocation2 + $0x250] sm:$0xff] }
  0x45   : > { %3604 = vmatmul.mubr.msk.f32.vlgmr.msra.gmra.mrb[0].mxu1 %vm465_vm1, %v385_v19 }
  0x46   : > { %4197 = vmatpush3.bf16.msra.mxu1 %v4194_v13  ;;  %3614 = vmatprep.mubr.msk.f32.mxu1 %vm465_vm1, %v547_v11 }
  0x47   : > { %3629 = vmatmul.mubr.msk.f32.gmra.mrb[2].mxu0 %vm693_vm2, %v691_v21  ;;  %4199 = vmatprep.subr.bf16.mxu1 %v4198_v22 }
  0x48   : > { %3631 = vmatprep.mubr.msk.f32.mxu0 %vm4722_vm0, %v5578_v1 }
  0x4a   : > { %4201 = vmatpush3.bf16.msra.mxu1 %v4198_v22 }
  0x4b   : > { %3634 = vmatprep.subr.mxu1 %v5578_v1  ;;  %3632 = vmatmul.mubr.msk.f32.gmra.mrb[4].mxu0 %vm693_vm2, %v692_v26 }
  0x4d   : > { %3615 = vmatmul.mubr.msk.f32.vlgmr.msra.gmra.mrb[2].mxu1 %vm465_vm1, %v548_v18 }
  0x4e   : > { %3617 = vmatprep.mubr.msk.f32.mxu1 %vm465_vm1, %v549_v20  ;;  %3635 = vmatpush3.msra.mxu1 %v383_v14 }
  0x4f   : > { %4207 = vmatprep.subr.bf16.mxu1 %v4974_v0 }
  0x51   : > { %3618 = vmatmul.mubr.msk.f32.gmra.mrb[4].mxu1 %vm465_vm1, %v550_v23 }
  0x52   : > { %3620 = vmatprep.mubr.msk.f32.mxu1 %vm465_vm1, %v551_v24 }
  0x55   : > { %3621 = vmatmul.mubr.msk.f32.gmra.mrb[6].mxu1 %vm465_vm1, %v552_v25 }
  0x56   : > { %3636 = vmatprep.mubr.msk.f32.mxu1 %vm4722_vm0, %v5578_v1 }
  0xaf   : > { %v790_v27 = vpop.permute.xlu1 %789 }
  0xb0   : > { %3637 = vmatmul.mubr.msk.f32.vlgmr.msra.gmra.mrb[8].mxu1 %vm693_vm2, %v790_v27 }
  0xb1   : > { %4209 = vmatpush3.bf16.msra.mxu1 %v4974_v0 }
  0xb2   : > { %4243 = vmatprep.subr.bf16.mxu1 %v4974_v0 }
  0xbb   : > { %v556_v29 = vpop.permute.xlu0 %555 }
  0xbf   : > { %v561_v34 = vpop.permute.xlu0 %560 }
  0xc0   : > { %v566_v39 = vpop.permute.xlu1 %565 }
  0xc3   : > { %v571_v40 = vpop.permute.xlu0 %570 }
 0x116   : > { %v4959_v41 = vpop.f32.mrb[0].mxu0 }
 0x117   : > { %v3627_v44 = vpop.f32.mrb[1].mxu0 }
 0x118   : > { %v3605_v30 = vpop.f32.mrb[0].mxu1  ;;  %v4999_v44 = vld [vmem:[#allocation2 + $0x48] sm:$0xff] }
 0x119   : > { %v544_v31 = vadd.f32 %v3605_v30, %v3204_v28  ;;  %v538_v32 = vpop.f32.mrb[1].mxu1 }
 0x11a   : > { %v539_v33 = vadd.f32 %v3204_v28, %v538_v32  ;;  %v4961_v47 = vpop.f32.mrb[2].mxu0 }
 0x11b   : > { %1339 = vrot.lane.b32.xlu0 %v544_v31, %s4724_s28  ;;  %v3630_v49 = vpop.f32.mrb[3].mxu0 }
 0x11c   : > { %1337 = vrot.lane.b32.xlu1 %v539_v33, %s4724_s28  ;;  %3643 = vmatprep.mubr.msk.f32.mxu0 %vm863_vm3, %v539_v33  ;;  %v5015_v49 = vld [vmem:[#allocation2 + $0xe8] sm:$0xff] }
 0x11e   : > { %v4966_v53 = vpop.f32.mrb[4].mxu0 }
 0x11f   : > { %580 = vperm.xlu0 %4590, %v552_v25   ;;  %v3633_v54 = vpop.f32.mrb[5].mxu0 }
 0x120   : > { %v3616_v35 = vpop.f32.mrb[2].mxu1  ;;  %575 = vperm.xlu1 %4591, %v551_v24   ;;  %v5025_v54 = vld [vmem:[#allocation2 + $0x160] sm:$0xff] }
 0x121   : > { %v667_v36 = vadd.f32 %v3616_v35, %v561_v34  ;;  %v661_v37 = vpop.f32.mrb[3].mxu1  ;;  %v973_v34 = vld [vmem:[%s5567_s5 + $0x8] sm:$0xff] }
 0x122   : > { %v662_v38 = vadd.f32 %v661_v37, %v556_v29 }
 0x123   : > { %1767 = vrot.lane.b32.xlu0 %v544_v31, %s4725_s21 }
 0x124   : > { %v4202_v42 = vpack.c.bf16 %v667_v36, %v662_v38  ;;  %v3619_v43 = vpop.f32.mrb[4].mxu1  ;;  %1765 = vrot.lane.b32.xlu1 %v539_v33, %s4725_s21  ;;  %v972_v33 = vld [vmem:[%s5567_s5] sm:$0xff] }
 0x125   : > { %v677_v45 = vadd.f32 %v3619_v43, %v571_v40  ;;  %v671_v46 = vpop.f32.mrb[5].mxu1  ;;  %4592 = vset.pattern.permute.xlu1 %v4726_v3  ;;  %v5055_v3 = vld [vmem:[#allocation2 + $0x278] sm:$0xff] }
 0x126   : > { %v672_v48 = vadd.f32 %v671_v46, %v566_v39  ;;  %4203 = vmatprep.subr.bf16.mxu0 %v4202_v42  ;;  %v4995_v39 = vld [vmem:[#allocation2 + $0x20] sm:$0xff]  ;;  %v5007_v46 = vld [vmem:[#allocation2 + $0x98] sm:$0xff] }
 0x127   : > { %4205 = vmatpush3.bf16.msra.mxu0 %v4202_v42  ;;  %2198 = vrot.lane.b32.xlu0 %v4908_v12, %s4728_s26  ;;  %s4653_s26 = sshll.u32 %s4736_s13, 4  ;;  %s4654_s26 = int_to_ptr.vmem [resolvable:$false] %s4653_s26 }
 0x128   : > { %v4963_v50 = vpack.c.bf16 %v677_v45, %v672_v48  ;;  %v3622_v51 = vpop.f32.mrb[6].mxu1  ;;  %786 = vperm.xlu1 %4592, %v4908_v12   ;;  %v5001_v45 = vld [vmem:[#allocation2 + $0x70] sm:$0xff]  ;;  %v5009_v48 = vld [vmem:[#allocation2 + $0xc0] sm:$0xff]  ;;  %s4655_s28 = scalar_lea.vmem %s4654_s26, 256 }
 0x129   : > { %v681_v52 = vpop.f32.mrb[7].mxu1 }
 0x12a   : > { %3644 = vmatmul.mubr.msk.f32.vlgmr.msra.gmra.mrb[6].mxu0 %vm863_vm3, %v544_v31 }
 0x12b   : > { %3657 = vmatprep.mubr.msk.f32.mxu0 %vm863_vm3, %v4995_v39 }
 0x183   : > { %v4979_v2 = vpop.f32.mrb[8].mxu1 }
 0x184   : > { %v3638_v4 = vpop.f32.mrb[9].mxu1 }
 0x185   : > { %v4727_v4 = vmov 0.0|0.0  }
 0x18d   : > { %v4968_v55 = vpop.permute.xlu0 %1339 }
 0x18e   : > { %v4970_v56 = vpop.permute.xlu1 %1337 }
 0x19e   : > { %v581_v57 = vpop.permute.xlu0 %580 }
 0x19f   : > { %v687_v58 = vadd.f32 %v3622_v51, %v581_v57  ;;  %v576_v59 = vpop.permute.xlu1 %575  ;;  %v5017_v51 = vld [vmem:[#allocation2 + $0x110] sm:$0xff]  ;;  %v5031_v57 = vld [vmem:[#allocation2 + $0x188] sm:$0xff] }
 0x1a0   : > { %v682_v60 = vadd.f32 %v681_v52, %v576_v59  ;;  %v5023_v52 = vld [vmem:[#allocation2 + $0x138] sm:$0xff] }
 0x1a1   : > { %v5039_v59 = vld [vmem:[#allocation2 + $0x1d8] sm:$0xff] }
 0x1a2   : > { %v4972_v61 = vpack.c.bf16 %v687_v58, %v682_v60  ;;  %v5033_v58 = vld [vmem:[#allocation2 + $0x1b0] sm:$0xff]  ;;  %v5041_v60 = vld [vmem:[#allocation2 + $0x200] sm:$0xff] }
 0x1fd   : > { %v3645_v5 = vpop.f32.mrb[6].mxu0 }
 0x1fe   : > { %v946_v6 = vsel %vm863_vm3, %v3645_v5, -inf  ;;  %v936_v7 = vpop.f32.mrb[7].mxu0 }
 0x1ff   : > { %v945_v8 = vsel %vm863_vm3, %v936_v7, -inf }
 0x200   : > { %v947_v9 = vmax.f32 %v945_v8, %v946_v6  ;;  %v5064_v6 = vld [vmem:[#allocation2] sm:$0xff] }
 0x202   : > { %v948_v10 = vrot.slane %v947_v9, 4 }
 0x204   : > { %v949_v11 = vmax.f32 %v947_v9, %v948_v10 }
 0x206   : > { %v950_v13 = vrot.slane %v949_v11, 2 }
 0x208   : > { %v951_v14 = vmax.f32 %v949_v11, %v950_v13  ;;  %v5068_v11 = vld [vmem:[#allocation2 + $0x78] sm:$0xff]  ;;  %v5070_v13 = vld [vmem:[#allocation2 + $0x50] sm:$0xff] }
 0x20a   : > { %v952_v15 = vrot.slane %v951_v14, 1 }
 0x20c   : > { %v953_v16 = vmax.f32 %v951_v14, %v952_v15 }
 0x20e   : > { %v954_v17 = vsub.f32 %v936_v7, %v953_v16  ;;  %v955_v18 = vsub.f32 %v3645_v5, %v953_v16  ;;  %v5062_v5 = vld [vmem:[#allocation2 + $0x28] sm:$0xff] }
 0x210   : > { %v956_v19 = vmul.f32 1.442695, %v954_v17  ;;  %v958_v20 = vmul.f32 1.442695, %v955_v18 }
 0x212   : > { %4597 = vpow2.f32 %v956_v19  ;;  %v5074_v19 = vld [vmem:[#allocation2 + $0xc8] sm:$0xff] }
 0x213   : > { %4599 = vpow2.f32 %v958_v20  ;;  %v5076_v20 = vld [vmem:[#allocation2 + $0xa0] sm:$0xff] }
 0x21c   : > { %v4598_v21 = vpop.eup %4597 }
 0x21d   : > { %v4600_v22 = vpop.eup %4599  ;;  %v960_v23 = vsel %vm863_vm3, %v4598_v21, 0.0 }
 0x21e   : > { %v961_v24 = vsel %vm863_vm3, %v4600_v22, 0.0 }
 0x21f   : > { %v962_v25 = vadd.f32 %v961_v24, %v960_v23 }
 0x221   : > { %v963_v26 = vrot.slane %v962_v25, 4 }
 0x223   : > { %v964_v27 = vadd.f32 %v963_v26, %v962_v25  ;;  %v5081_v26 = vld [vmem:[#allocation2 + $0x118] sm:$0xff] }
 0x225   : > { %v965_v28 = vrot.slane %v964_v27, 2 }
 0x227   : > { %v966_v29 = vadd.f32 %v965_v28, %v964_v27  ;;  %v5083_v27 = vld [vmem:[#allocation2 + $0xf0] sm:$0xff] }
 0x229   : > { %v967_v30 = vrot.slane %v966_v29, 1 }
 0x22b   : > { %v968_v31 = vadd.f32 %v967_v30, %v966_v29 }
 0x22d   : > { %4601 = vrcp.f32 %v968_v31 }
 0x237   : > { %v4602_v32 = vpop.eup %4601 }
 0x238   : > { %v970_v35 = vmul.f32 %v4602_v32, %v4598_v21  ;;  %v971_v36 = vmul.f32 %v4602_v32, %v4600_v22 }
 0x23a   : > { %v974_v37 = vadd.f32 %v972_v33, %v970_v35  ;;  %v975_v38 = vadd.f32 %v973_v34, %v971_v36  ;;  %v5088_v33 = vld [vmem:[#allocation2 + $0x168] sm:$0xff]  ;;  %v5090_v34 = vld [vmem:[#allocation2 + $0x140] sm:$0xff] }
 0x23c   : > { %3650 = vmatprep.mubr.msk.f32.mxu1 %vm863_vm3, %v974_v37 }
 0x23d   : > { %3651 = vmatmul.mubr.msk.f32.vlgmr.msra.gmra.mrb[10].mxu1 %vm863_vm3, %v975_v38 }
 0x23e   : > { %4245 = vmatpush3.bf16.msra.mxu1 %v4974_v0 }
 0x310   : > { %v3652_v40 = vpop.f32.mrb[10].mxu1 }
 0x311   : > { %v1048_v42 = vpop.f32.mrb[11].mxu1 }
 0x312   : > { %v4210_v43 = vpack.c.bf16 %v3652_v40, %v1048_v42  ;;  %v5095_v42 = vld [vmem:[#allocation2 + $0x1b8] sm:$0xff] }
 0x314   : > { %4211 = vmatprep.subr.bf16.mxu0 %v4210_v43 }
 0x315   : > { %4213 = vmatpush3.bf16.msra.mxu0 %v4210_v43  ;;  %v5097_v43 = vld [vmem:[#allocation2 + $0x190] sm:$0xff] }
 0x316   : > { %4214 = vmatprep.subr.bf16.mxu0 %v4727_v4 }
 0x318   : > { %3658 = vmatmul.mubr.msk.f32.vlgmr.msra.gmra.mrb[8].mxu0 %vm863_vm3, %v4999_v44 }
 0x319   : > { %3660 = vmatprep.mubr.msk.f32.mxu0 %vm863_vm3, %v5001_v45 }
 0x31c   : > { %3661 = vmatmul.mubr.msk.f32.gmra.mrb[10].mxu0 %vm863_vm3, %v5007_v46 }
 0x31d   : > { %3663 = vmatprep.mubr.msk.f32.mxu0 %vm863_vm3, %v5009_v48 }
 0x320   : > { %3664 = vmatmul.mubr.msk.f32.gmra.mrb[12].mxu0 %vm863_vm3, %v5015_v49 }
 0x321   : > { %3666 = vmatprep.mubr.msk.f32.mxu0 %vm863_vm3, %v5017_v51 }
 0x324   : > { %3667 = vmatmul.mubr.msk.f32.gmra.mrb[14].mxu0 %vm863_vm3, %v5023_v52 }
 0x325   : > { %3669 = vmatprep.mubr.msk.f32.mxu0 %vm863_vm3, %v5025_v54 }
 0x328   : > { %3670 = vmatmul.mubr.msk.f32.gmra.mrb[16].mxu0 %vm863_vm3, %v5031_v57 }
 0x329   : > { %3672 = vmatprep.mubr.msk.f32.mxu0 %vm863_vm3, %v5033_v58 }
 0x32c   : > { %3673 = vmatmul.mubr.msk.f32.gmra.mrb[18].mxu0 %vm863_vm3, %v5039_v59 }
 0x32d   : > { %3675 = vmatprep.mubr.msk.f32.mxu0 %vm863_vm3, %v5041_v60 }
 0x330   : > { %3676 = vmatmul.mubr.msk.f32.gmra.mrb[20].mxu0 %vm863_vm3, %v5047_v62 }
 0x331   : > { %3678 = vmatprep.mubr.msk.f32.mxu0 %vm863_vm3, %v5049_v63 }
 0x334   : > { %3679 = vmatmul.mubr.msk.f32.gmra.mrb[22].mxu0 %vm863_vm3, %v5055_v3 }
 0x335   : > { %3713 = vmatprep.mubr.msk.f32.mxu0 %vm4722_vm0, %v5578_v1 }
 0x3eb   : > { %v3659_v7 = vpop.f32.mrb[8].mxu0 }
 0x3ec   : > { %v1251_v8 = vmul.f32 %v3659_v7, %v5062_v5  ;;  %v1171_v9 = vpop.f32.mrb[9].mxu0 }
 0x3ed   : > { %v1250_v10 = vmul.f32 %v1171_v9, %v5064_v6 }
 0x3ef   : > { %v4215_v14 = vpack.c.bf16 %v1251_v8, %v1250_v10  ;;  %v3662_v15 = vpop.f32.mrb[10].mxu0 }
 0x3f0   : > { %v1253_v16 = vmul.f32 %v3662_v15, %v5068_v11  ;;  %v1181_v17 = vpop.f32.mrb[11].mxu0  ;;  %v5102_v15 = vld [vmem:[#allocation2 + $0x208] sm:$0xff] }
 0x3f1   : > { %v1252_v18 = vmul.f32 %v1181_v17, %v5070_v13  ;;  %4216 = vmatpush3.bf16.msra.mxu0 %v4215_v14 }
 0x3f2   : > { %4217 = vmatprep.subr.bf16.mxu0 %v4727_v4 }
 0x3f3   : > { %v4218_v21 = vpack.c.bf16 %v1253_v16, %v1252_v18  ;;  %v3665_v22 = vpop.f32.mrb[12].mxu0  ;;  %v5104_v16 = vld [vmem:[#allocation2 + $0x1e0] sm:$0xff] }
 0x3f4   : > { %v1255_v23 = vmul.f32 %v3665_v22, %v5074_v19  ;;  %v1191_v24 = vpop.f32.mrb[13].mxu0 }
 0x3f5   : > { %v1254_v25 = vmul.f32 %v1191_v24, %v5076_v20  ;;  %4219 = vmatpush3.bf16.msra.mxu0 %v4218_v21  ;;  %v5109_v24 = vld [vmem:[#allocation2 + $0x258] sm:$0xff] }
 0x3f6   : > { %4220 = vmatprep.subr.bf16.mxu0 %v4727_v4 }
 0x3f7   : > { %v4221_v28 = vpack.c.bf16 %v1255_v23, %v1254_v25  ;;  %v3668_v29 = vpop.f32.mrb[14].mxu0  ;;  %v5111_v25 = vld [vmem:[#allocation2 + $0x230] sm:$0xff] }
 0x3f8   : > { %v1257_v30 = vmul.f32 %v3668_v29, %v5081_v26  ;;  %v1201_v31 = vpop.f32.mrb[15].mxu0 }
 0x3f9   : > { %v1256_v32 = vmul.f32 %v1201_v31, %v5083_v27  ;;  %4222 = vmatpush3.bf16.msra.mxu0 %v4221_v28 }
 0x3fa   : > { %4223 = vmatprep.subr.bf16.mxu0 %v4727_v4 }
 0x3fb   : > { %v4224_v35 = vpack.c.bf16 %v1257_v30, %v1256_v32  ;;  %v3671_v36 = vpop.f32.mrb[16].mxu0 }
 0x3fc   : > { %v1259_v37 = vmul.f32 %v3671_v36, %v5088_v33  ;;  %v1211_v38 = vpop.f32.mrb[17].mxu0  ;;  %v1766_v36 = vpop.permute.xlu1 %1765 }
 0x3fd   : > { %v1258_v40 = vmul.f32 %v1211_v38, %v5090_v34  ;;  %4225 = vmatpush3.bf16.msra.mxu0 %v4224_v35 }
 0x3fe   : > { %4226 = vmatprep.subr.bf16.mxu0 %v4727_v4 }
 0x3ff   : > { %v4227_v7 = vpack.c.bf16 %v1259_v37, %v1258_v40  ;;  %v3674_v8 = vpop.f32.mrb[18].mxu0  ;;  %v1768_v37 = vpop.permute.xlu0 %1767 }
 0x400   : > { %v1261_v9 = vmul.f32 %v3674_v8, %v5095_v42  ;;  %v1221_v10 = vpop.f32.mrb[19].mxu0 }
 0x401   : > { %v1260_v14 = vmul.f32 %v1221_v10, %v5097_v43  ;;  %4228 = vmatpush3.bf16.msra.mxu0 %v4227_v7 }
 0x402   : > { %4229 = vmatprep.subr.bf16.mxu0 %v4727_v4 }
 0x403   : > { %v4230_v17 = vpack.c.bf16 %v1261_v9, %v1260_v14  ;;  %v3677_v18 = vpop.f32.mrb[20].mxu0 }
 0x404   : > { %v1263_v21 = vmul.f32 %v3677_v18, %v5102_v15  ;;  %v1231_v22 = vpop.f32.mrb[21].mxu0 }
 0x405   : > { %v1262_v23 = vmul.f32 %v1231_v22, %v5104_v16  ;;  %4231 = vmatpush3.bf16.msra.mxu0 %v4230_v17 }
 0x406   : > { %4232 = vmatprep.subr.bf16.mxu0 %v4727_v4 }
 0x407   : > { %v4233_v28 = vpack.c.bf16 %v1263_v21, %v1262_v23  ;;  %v3680_v29 = vpop.f32.mrb[22].mxu0 }
 0x408   : > { %v1265_v30 = vmul.f32 %v3680_v29, %v5109_v24  ;;  %v1241_v31 = vpop.f32.mrb[23].mxu0 }
 0x409   : > { %v1264_v32 = vmul.f32 %v1241_v31, %v5111_v25  ;;  %4234 = vmatpush3.bf16.msra.mxu0 %v4233_v28 }
 0x40a   : > { %4235 = vmatprep.subr.bf16.mxu0 %v4727_v4 }
 0x40b   : > { %v4236_v35 = vpack.c.bf16 %v1265_v30, %v1264_v32 }
 0x40d   : > { %4237 = vmatpush3.bf16.msra.mxu0 %v4236_v35 }
 0x40e   : > { %4239 = vmatprep.subr.bf16.mxu0 %v4963_v50 }
 0x410   : > { %3714 = vmatmul.mubr.f32.vlgmr.msra.gmra.mrb[24].mxu0 %v4959_v41  ;;  %v787_v41 = vpop.permute.xlu1 %786 }
 0x411   : > { %4241 = vmatpush3.bf16.msra.mxu0 %v4963_v50  ;;  %3720 = vmatprep.mubr.msk.f32.mxu0 %vm863_vm3, %v4970_v56  ;;  %v860_v50 = vadd.f32 %v4979_v2, %v787_v41 }
 0x412   : > { %4275 = vmatprep.subr.bf16.mxu0 %v4972_v61 }
 0x414   : > { %3721 = vmatmul.mubr.msk.f32.vlgmr.msra.gmra.mrb[26].mxu0 %vm863_vm3, %v4968_v55 }
 0x415   : > { %4277 = vmatpush3.bf16.msra.mxu0 %v4972_v61  ;;  %3797 = vmatprep.mubr.msk.f32.mxu0 %vm863_vm3, %v1766_v36 }
 0x418   : > { %3798 = vmatmul.mubr.msk.f32.vlgmr.msra.gmra.mrb[28].mxu0 %vm863_vm3, %v1768_v37 }
 0x419   : > { %3811 = vmatprep.mubr.msk.f32.mxu0 %vm863_vm3, %v4995_v39 }
 0x4e3   : > { %v1332_v56 = vpop.f32.mrb[24].mxu0 }
 0x4e4   : > { %v5131_v38 = vadd.f32 %v1332_v56, %v860_v50  ;;  %v3715_v40 = vpop.f32.mrb[25].mxu0 }
 0x4e7   : > { %v3722_v7 = vpop.f32.mrb[26].mxu0 }
 0x4e8   : > { %v1421_v55 = vsel %vm863_vm3, %v3722_v7, -inf  ;;  %v1411_v8 = vpop.f32.mrb[27].mxu0 }
 0x4e9   : > { %v1420_v61 = vsel %vm863_vm3, %v1411_v8, -inf }
 0x4ea   : > { %v1422_v9 = vmax.f32 %v1420_v61, %v1421_v55 }
 0x4eb   : > { %v3799_v10 = vpop.f32.mrb[28].mxu0 }
 0x4ec   : > { %v1423_v14 = vrot.slane %v1422_v9, 4  ;;  %v1849_v17 = vsel %vm863_vm3, %v3799_v10, -inf  ;;  %v1839_v18 = vpop.f32.mrb[29].mxu0 }
 0x4ed   : > { %v1848_v21 = vsel %vm863_vm3, %v1839_v18, -inf }
 0x4ee   : > { %v1424_v22 = vmax.f32 %v1422_v9, %v1423_v14  ;;  %v1850_v2 = vmax.f32 %v1848_v21, %v1849_v17 }
 0x4f0   : > { %v1425_v23 = vrot.slane %v1424_v22, 2  ;;  %v1851_v28 = vrot.slane %v1850_v2, 4 }
 0x4f2   : > { %v1426_v29 = vmax.f32 %v1424_v22, %v1425_v23  ;;  %v1852_v30 = vmax.f32 %v1850_v2, %v1851_v28 }
 0x4f4   : > { %v1427_v31 = vrot.slane %v1426_v29, 1  ;;  %v1853_v32 = vrot.slane %v1852_v30, 2 }
 0x4f6   : > { %v1428_v35 = vmax.f32 %v1426_v29, %v1427_v31  ;;  %v1854_v36 = vmax.f32 %v1852_v30, %v1853_v32 }
 0x4f8   : > { %v1429_v37 = vsub.f32 %v1411_v8, %v1428_v35  ;;  %v1430_v41 = vsub.f32 %v3722_v7, %v1428_v35  ;;  %v1855_v50 = vrot.slane %v1854_v36, 1 }
 0x4fa   : > { %v1431_v56 = vmul.f32 1.442695, %v1429_v37  ;;  %v1433_v40 = vmul.f32 1.442695, %v1430_v41  ;;  %v1856_v55 = vmax.f32 %v1854_v36, %v1855_v50 }
 0x4fc   : > { %4603 = vpow2.f32 %v1431_v56  ;;  %v1857_v61 = vsub.f32 %v1839_v18, %v1856_v55  ;;  %v1858_v1 = vsub.f32 %v3799_v10, %v1856_v55 }
 0x4fd   : > { %4605 = vpow2.f32 %v1433_v40 }
 0x4fe   : > { %v1859_v9 = vmul.f32 1.442695, %v1857_v61  ;;  %v1861_v14 = vmul.f32 1.442695, %v1858_v1  ;;  %v3239_v61 = vld [vmem:[%s5567_s5 + $0x10] sm:$0xff] }
 0x500   : > { %4607 = vpow2.f32 %v1859_v9  ;;  %v3240_v9 = vld [vmem:[%s5567_s5 + $0x18] sm:$0xff] }
 0x501   : > { %4609 = vpow2.f32 %v1861_v14 }
 0x506   : > { %v4604_v17 = vpop.eup %4603 }
 0x507   : > { %v4606_v21 = vpop.eup %4605  ;;  %v1435_v22 = vsel %vm863_vm3, %v4604_v17, 0.0 }
 0x508   : > { %v1436_v2 = vsel %vm863_vm3, %v4606_v21, 0.0 }
 0x509   : > { %v1437_v8 = vadd.f32 %v1436_v2, %v1435_v22 }
 0x50a   : > { %v4608_v7 = vpop.eup %4607 }
 0x50b   : > { %v4610_v23 = vpop.eup %4609  ;;  %v1438_v28 = vrot.slane %v1437_v8, 4  ;;  %v1863_v29 = vsel %vm863_vm3, %v4608_v7, 0.0 }
 0x50c   : > { %v1864_v18 = vsel %vm863_vm3, %v4610_v23, 0.0 }
 0x50d   : > { %v1439_v10 = vadd.f32 %v1438_v28, %v1437_v8  ;;  %v1865_v30 = vadd.f32 %v1864_v18, %v1863_v29 }
 0x50f   : > { %v1440_v31 = vrot.slane %v1439_v10, 2  ;;  %v1866_v1 = vrot.slane %v1865_v30, 4 }
 0x511   : > { %v1441_v32 = vadd.f32 %v1440_v31, %v1439_v10  ;;  %v1867_v35 = vadd.f32 %v1866_v1, %v1865_v30 }
 0x513   : > { %v1442_v36 = vrot.slane %v1441_v32, 1  ;;  %v1868_v37 = vrot.slane %v1867_v35, 2 }
 0x515   : > { %v1443_v41 = vadd.f32 %v1442_v36, %v1441_v32  ;;  %v1869_v50 = vadd.f32 %v1868_v37, %v1867_v35 }
 0x517   : > { %v1870_v56 = vrot.slane %v1869_v50, 1  ;;  %4611 = vrcp.f32 %v1443_v41 }
 0x519   : > { %v1871_v40 = vadd.f32 %v1870_v56, %v1869_v50 }
 0x51b   : > { %4613 = vrcp.f32 %v1871_v40 }
 0x521   : > { %v4612_v55 = vpop.eup %4611 }
 0x522   : > { %v1445_v14 = vmul.f32 %v4612_v55, %v4604_v17  ;;  %v1446_v22 = vmul.f32 %v4612_v55, %v4606_v21 }
 0x524   : > { %v1450_v2 = vadd.f32 %v3239_v61, %v1445_v14  ;;  %v1451_v8 = vadd.f32 %v3240_v9, %v1446_v22 }
 0x525   : > { %v4614_v28 = vpop.eup %4613 }
 0x526   : > { %3727 = vmatprep.mubr.msk.f32.mxu1 %vm863_vm3, %v1450_v2  ;;  %v5148_v29 = vmul.f32 %v4614_v28, %v4608_v7  ;;  %v5150_v18 = vmul.f32 %v4614_v28, %v4610_v23 }
 0x527   : > { %3728 = vmatmul.mubr.msk.f32.vlgmr.msra.gmra.mrb[12].mxu1 %vm863_vm3, %v1451_v8 }
 0x528   : > { %3734 = vmatprep.mubr.msk.f32.mxu1 %vm863_vm3, %v4995_v39  ;;  %v5592_v39 = vmov 0.0  }
 0x5fa   : > { %v3729_v10 = vpop.f32.mrb[12].mxu1 }
 0x5fb   : > { %v1524_v30 = vpop.f32.mrb[13].mxu1 }
 0x5fc   : > { %v4246_v31 = vpack.c.bf16 %v3729_v10, %v1524_v30 }
 0x5fe   : > { %4247 = vmatprep.subr.bf16.mxu1 %v4246_v31 }
 0x5ff   : > { %4249 = vmatpush3.bf16.msra.mxu1 %v4246_v31 }
 0x600   : > { %4250 = vmatprep.subr.bf16.mxu1 %v4727_v4 }
 0x602   : > { %3735 = vmatmul.mubr.msk.f32.vlgmr.msra.gmra.mrb[14].mxu1 %vm863_vm3, %v4999_v44 }
 0x603   : > { %3737 = vmatprep.mubr.msk.f32.mxu1 %vm863_vm3, %v5001_v45 }
 0x606   : > { %3738 = vmatmul.mubr.msk.f32.gmra.mrb[16].mxu1 %vm863_vm3, %v5007_v46 }
 0x607   : > { %3740 = vmatprep.mubr.msk.f32.mxu1 %vm863_vm3, %v5009_v48 }
 0x60a   : > { %3741 = vmatmul.mubr.msk.f32.gmra.mrb[18].mxu1 %vm863_vm3, %v5015_v49 }
 0x60b   : > { %3743 = vmatprep.mubr.msk.f32.mxu1 %vm863_vm3, %v5017_v51 }
 0x60e   : > { %3744 = vmatmul.mubr.msk.f32.gmra.mrb[20].mxu1 %vm863_vm3, %v5023_v52 }
 0x60f   : > { %3746 = vmatprep.mubr.msk.f32.mxu1 %vm863_vm3, %v5025_v54 }
 0x612   : > { %3747 = vmatmul.mubr.msk.f32.gmra.mrb[22].mxu1 %vm863_vm3, %v5031_v57 }
 0x613   : > { %3749 = vmatprep.mubr.msk.f32.mxu1 %vm863_vm3, %v5033_v58 }
 0x616   : > { %3750 = vmatmul.mubr.msk.f32.gmra.mrb[24].mxu1 %vm863_vm3, %v5039_v59 }
 0x617   : > { %3752 = vmatprep.mubr.msk.f32.mxu1 %vm863_vm3, %v5041_v60 }
 0x61a   : > { %3753 = vmatmul.mubr.msk.f32.gmra.mrb[26].mxu1 %vm863_vm3, %v5047_v62 }
 0x61b   : > { %3755 = vmatprep.mubr.msk.f32.mxu1 %vm863_vm3, %v5049_v63 }
 0x61e   : > { %3756 = vmatmul.mubr.msk.f32.gmra.mrb[28].mxu1 %vm863_vm3, %v5055_v3 }
 0x61f   : > { %3790 = vmatprep.mubr.msk.f32.mxu1 %vm4722_vm0, %v5592_v39 }
 0x6d5   : > { %v3736_v17 = vpop.f32.mrb[14].mxu1 }
 0x6d6   : > { %v1679_v21 = vmul.f32 %v3736_v17, %v5062_v5  ;;  %v1599_v7 = vpop.f32.mrb[15].mxu1 }
 0x6d7   : > { %v1678_v23 = vmul.f32 %v1599_v7, %v5064_v6 }
 0x6d9   : > { %v4251_v1 = vpack.c.bf16 %v1679_v21, %v1678_v23  ;;  %v3739_v32 = vpop.f32.mrb[16].mxu1 }
 0x6da   : > { %v1681_v35 = vmul.f32 %v3739_v32, %v5068_v11  ;;  %v1609_v36 = vpop.f32.mrb[17].mxu1 }
 0x6db   : > { %v1680_v37 = vmul.f32 %v1609_v36, %v5070_v13  ;;  %4252 = vmatpush3.bf16.msra.mxu1 %v4251_v1 }
 0x6dc   : > { %4253 = vmatprep.subr.bf16.mxu1 %v4727_v4 }
 0x6dd   : > { %v4254_v41 = vpack.c.bf16 %v1681_v35, %v1680_v37  ;;  %v3742_v50 = vpop.f32.mrb[18].mxu1 }
 0x6de   : > { %v1683_v56 = vmul.f32 %v3742_v50, %v5074_v19  ;;  %v1619_v40 = vpop.f32.mrb[19].mxu1 }
 0x6df   : > { %v1682_v55 = vmul.f32 %v1619_v40, %v5076_v20  ;;  %4255 = vmatpush3.bf16.msra.mxu1 %v4254_v41 }
 0x6e0   : > { %4256 = vmatprep.subr.bf16.mxu1 %v4727_v4 }
 0x6e1   : > { %v4257_v61 = vpack.c.bf16 %v1683_v56, %v1682_v55  ;;  %v3745_v9 = vpop.f32.mrb[20].mxu1 }
 0x6e2   : > { %v1685_v14 = vmul.f32 %v3745_v9, %v5081_v26  ;;  %v1629_v22 = vpop.f32.mrb[21].mxu1 }
 0x6e3   : > { %v1684_v2 = vmul.f32 %v1629_v22, %v5083_v27  ;;  %4258 = vmatpush3.bf16.msra.mxu1 %v4257_v61 }
 0x6e4   : > { %4259 = vmatprep.subr.bf16.mxu1 %v4727_v4 }
 0x6e5   : > { %v4260_v8 = vpack.c.bf16 %v1685_v14, %v1684_v2  ;;  %v3748_v28 = vpop.f32.mrb[22].mxu1  ;;  %v3261_v14 = vld [vmem:[%s5567_s5 + $0x20] sm:$0xff]  ;;  %v3262_v2 = vld [vmem:[%s5567_s5 + $0x28] sm:$0xff] }
 0x6e6   : > { %v1687_v10 = vmul.f32 %v3748_v28, %v5088_v33  ;;  %v1639_v30 = vpop.f32.mrb[23].mxu1  ;;  %v1878_v22 = vadd.f32 %v3261_v14, %v5148_v29  ;;  %v413_v14 = vld [vmem:[#allocation2 + $0x120] sm:$0xff] }
 0x6e7   : > { %v1686_v31 = vmul.f32 %v1639_v30, %v5090_v34  ;;  %4261 = vmatpush3.bf16.msra.mxu1 %v4260_v8  ;;  %v1879_v8 = vadd.f32 %v3262_v2, %v5150_v18  ;;  %v414_v2 = vld [vmem:[#allocation2 + $0x148] sm:$0xff] }
 0x6e8   : > { %4262 = vmatprep.subr.bf16.mxu1 %v4727_v4 }
 0x6e9   : > { %v4263_v17 = vpack.c.bf16 %v1687_v10, %v1686_v31  ;;  %v3751_v21 = vpop.f32.mrb[24].mxu1 }
 0x6ea   : > { %v1689_v7 = vmul.f32 %v3751_v21, %v5095_v42  ;;  %v1649_v23 = vpop.f32.mrb[25].mxu1 }
 0x6eb   : > { %v1688_v1 = vmul.f32 %v1649_v23, %v5097_v43  ;;  %4264 = vmatpush3.bf16.msra.mxu1 %v4263_v17 }
 0x6ec   : > { %4265 = vmatprep.subr.bf16.mxu1 %v4727_v4 }
 0x6ed   : > { %v4266_v32 = vpack.c.bf16 %v1689_v7, %v1688_v1  ;;  %v3754_v35 = vpop.f32.mrb[26].mxu1 }
 0x6ee   : > { %v1691_v36 = vmul.f32 %v3754_v35, %v5102_v15  ;;  %v1659_v37 = vpop.f32.mrb[27].mxu1 }
 0x6ef   : > { %v1690_v41 = vmul.f32 %v1659_v37, %v5104_v16  ;;  %4267 = vmatpush3.bf16.msra.mxu1 %v4266_v32 }
 0x6f0   : > { %4268 = vmatprep.subr.bf16.mxu1 %v4727_v4 }
 0x6f1   : > { %v4269_v50 = vpack.c.bf16 %v1691_v36, %v1690_v41  ;;  %v3757_v56 = vpop.f32.mrb[28].mxu1  ;;  %v4729_v41 = vmov 105  }
 0x6f2   : > { %v1693_v40 = vmul.f32 %v3757_v56, %v5109_v24  ;;  %v1669_v55 = vpop.f32.mrb[29].mxu1  ;;  %4593 = vset.pattern.permute.xlu1 %v4729_v41  ;;  %v409_v56 = vld [vmem:[#allocation2 + $0x80] sm:$0xff] }
 0x6f3   : > { %v1692_v61 = vmul.f32 %v1669_v55, %v5111_v25  ;;  %4270 = vmatpush3.bf16.msra.mxu1 %v4269_v50  ;;  %v408_v50 = vld [vmem:[#allocation2 + $0x58] sm:$0xff]  ;;  %v411_v55 = vld [vmem:[#allocation2 + $0xd0] sm:$0xff] }
 0x6f4   : > { %4271 = vmatprep.subr.bf16.mxu1 %v4727_v4 }
 0x6f5   : > { %v4272_v9 = vpack.c.bf16 %v1693_v40, %v1692_v61  ;;  %v410_v40 = vld [vmem:[#allocation2 + $0xa8] sm:$0xff] }
 0x6f6   : > { %v5304_v61 = vpack.c.bf16 %v411_v55, %v410_v40 }
 0x6f7   : > { %4273 = vmatpush3.bf16.msra.mxu1 %v4272_v9  ;;  %v412_v9 = vld [vmem:[#allocation2 + $0xf8] sm:$0xff] }
 0x6f8   : > { %4279 = vmatprep.subr.bf16.mxu1 %v4974_v0 }
 0x6fa   : > { %3791 = vmatmul.mubr.f32.vlgmr.msra.gmra.mrb[30].mxu1 %v4961_v47 }
 0x6fb   : > { %4281 = vmatpush3.bf16.msra.mxu1 %v4974_v0  ;;  %3804 = vmatprep.mubr.msk.f32.mxu1 %vm863_vm3, %v1878_v22  ;;  %v5308_v22 = vpack.c.bf16 %v413_v14, %v412_v9  ;;  %v4731_v14 = vmov 107  }
 0x6fc   : > { %4310 = vmatprep.subr.bf16.mxu1 %v4727_v4  ;;  %4595 = vset.pattern.permute.xlu0 %v4731_v14 }
 0x6fe   : > { %3805 = vmatmul.mubr.msk.f32.vlgmr.msra.gmra.mrb[32].mxu1 %vm863_vm3, %v1879_v8  ;;  %v415_v8 = vld [vmem:[#allocation2 + $0x170] sm:$0xff] }
 0x6ff   : > { %3907 = vmatprep.mubr.msk.f32.mxu1 %vm4722_vm0, %v5592_v39 }
 0x7cd   : > { %v1760_v29 = vpop.f32.mrb[30].mxu1 }
 0x7ce   : > { %v5228_v28 = vadd.f32 %v1760_v29, %v5131_v38  ;;  %v3792_v10 = vpop.f32.mrb[31].mxu1  ;;  %v5312_v29 = vpack.c.bf16 %v415_v8, %v414_v2 }
 0x7cf   : > { %v416_v10 = vld [vmem:[#allocation2 + $0x198] sm:$0xff] }
 0x7d1   : > { %v3806_v30 = vpop.f32.mrb[32].mxu1 }
 0x7d2   : > { %v1952_v47 = vpop.f32.mrb[33].mxu1 }
 0x7d3   : > { %v4282_v31 = vpack.c.bf16 %v3806_v30, %v1952_v47  ;;  %v417_v30 = vld [vmem:[#allocation2 + $0x1c0] sm:$0xff] }
 0x7d4   : > { %v5316_v47 = vpack.c.bf16 %v417_v30, %v416_v10 }
 0x7d5   : > { %4283 = vmatprep.subr.bf16.mxu0 %v4282_v31 }
 0x7d6   : > { %4285 = vmatpush3.bf16.msra.mxu0 %v4282_v31  ;;  %v418_v31 = vld [vmem:[#allocation2 + $0x1e8] sm:$0xff] }
 0x7d7   : > { %4286 = vmatprep.subr.bf16.mxu0 %v4727_v4 }
 0x7d9   : > { %3812 = vmatmul.mubr.msk.f32.vlgmr.msra.gmra.mrb[30].mxu0 %vm863_vm3, %v4999_v44 }
 0x7da   : > { %3814 = vmatprep.mubr.msk.f32.mxu0 %vm863_vm3, %v5001_v45 }
 0x7dd   : > { %3815 = vmatmul.mubr.msk.f32.gmra.mrb[32].mxu0 %vm863_vm3, %v5007_v46 }
 0x7de   : > { %3817 = vmatprep.mubr.msk.f32.mxu0 %vm863_vm3, %v5009_v48 }
 0x7e1   : > { %3818 = vmatmul.mubr.msk.f32.gmra.mrb[34].mxu0 %vm863_vm3, %v5015_v49 }
 0x7e2   : > { %3820 = vmatprep.mubr.msk.f32.mxu0 %vm863_vm3, %v5017_v51 }
 0x7e5   : > { %3821 = vmatmul.mubr.msk.f32.gmra.mrb[36].mxu0 %vm863_vm3, %v5023_v52 }
 0x7e6   : > { %3823 = vmatprep.mubr.msk.f32.mxu0 %vm863_vm3, %v5025_v54 }
 0x7e9   : > { %3824 = vmatmul.mubr.msk.f32.gmra.mrb[38].mxu0 %vm863_vm3, %v5031_v57 }
 0x7ea   : > { %3826 = vmatprep.mubr.msk.f32.mxu0 %vm863_vm3, %v5033_v58 }
 0x7ed   : > { %3827 = vmatmul.mubr.msk.f32.gmra.mrb[40].mxu0 %vm863_vm3, %v5039_v59 }
 0x7ee   : > { %3829 = vmatprep.mubr.msk.f32.mxu0 %vm863_vm3, %v5041_v60 }
 0x7f1   : > { %3830 = vmatmul.mubr.msk.f32.gmra.mrb[42].mxu0 %vm863_vm3, %v5047_v62 }
 0x7f2   : > { %3832 = vmatprep.mubr.msk.f32.mxu0 %vm863_vm3, %v5049_v63 }
 0x7f5   : > { %3833 = vmatmul.mubr.msk.f32.gmra.mrb[44].mxu0 %vm863_vm3, %v5055_v3 }
 0x7f6   : > { %3867 = vmatprep.mubr.msk.f32.mxu0 %vm4722_vm0, %v5592_v39 }
 0x8ac   : > { %v3813_v0 = vpop.f32.mrb[30].mxu0 }
 0x8ad   : > { %v2107_v44 = vmul.f32 %v3813_v0, %v5062_v5  ;;  %v2027_v45 = vpop.f32.mrb[31].mxu0  ;;  %v419_v0 = vld [vmem:[#allocation2 + $0x210] sm:$0xff] }
 0x8ae   : > { %v2106_v46 = vmul.f32 %v2027_v45, %v5064_v6 }
 0x8b0   : > { %v4287_v48 = vpack.c.bf16 %v2107_v44, %v2106_v46  ;;  %v3816_v49 = vpop.f32.mrb[32].mxu0  ;;  %v5320_v44 = vpack.c.bf16 %v419_v0, %v418_v31  ;;  %v422_v46 = vld [vmem:[#allocation2 + $0x10] sm:$0xff]  ;;  %v4620_v31 = vld [vmem:[%s4900_s7] sm:$0xff]  ;;  %s366_s7 = sand.u32 1, %s4707_s10  }
 0x8b1   : > { %v2109_v51 = vmul.f32 %v3816_v49, %v5068_v11  ;;  %v2037_v52 = vpop.f32.mrb[33].mxu0  ;;  %s3198_s14 = sshll.u32 %s366_s7, 3  ;;  %s3084_s17 = scalar_lea.sflag [#allocation4], %s366_s7 }
 0x8b2   : > { %v2108_v54 = vmul.f32 %v2037_v52, %v5070_v13  ;;  %4288 = vmatpush3.bf16.msra.mxu0 %v4287_v48  ;;  %v423_v48 = vld [vmem:[#allocation2 + $0x38] sm:$0xff]  ;;  %s368_s11 = scalar_lea.vmem [#allocation5], %s3198_s14 }
 0x8b3   : > { %4289 = vmatprep.subr.bf16.mxu0 %v4727_v4  ;;  %s3097_s15 = sshll.u32 %s368_s11, 4  ;;  %s5522_s15 = int_to_ptr.vmem [resolvable:$true] %s3097_s15 }
 0x8b4   : > { %v4290_v57 = vpack.c.bf16 %v2109_v51, %v2108_v54  ;;  %v3819_v58 = vpop.f32.mrb[34].mxu0  ;;  %v2199_v54 = vpop.permute.xlu0 %2198  ;;  %s4649_s25 = scalar_lea.vmem %s5522_s15, 128  ;;  %p4656_p2 = scmp.lt.s32.totalorder %s5522_s15, %s4654_s26 }
 0x8b5   : > { %v2111_v12 = vmul.f32 %v3819_v58, %v5074_v19  ;;  %v2047_v59 = vpop.f32.mrb[35].mxu0  ;;  %v424_v58 = vld [vmem:[#allocation2 + $0x60] sm:$0xff]  ;;  %p4650_p6 = scmp.ne.s32.totalorder %s5522_s15, %s4649_s25  ;;  %p4657_p3 = scmp.lt.s32.totalorder %s4655_s28, %s4649_s25 }
 0x8b6   : > { %v2110_v60 = vmul.f32 %v2047_v59, %v5076_v20  ;;  %4291 = vmatpush3.bf16.msra.mxu0 %v4290_v57  ;;  %v5326_v57 = vpack.c.bf16 %v423_v48, %v422_v46 }
 0x8b7   : > { %4292 = vmatprep.subr.bf16.mxu0 %v4727_v4  ;;  %p4651_p10 = pnand %p4650_p6, %p5593_p9  ;;  %p4658_p4 = por %p4657_p3, %p4656_p2 }
 0x8b8   : > { %v4293_v62 = vpack.c.bf16 %v2111_v12, %v2110_v60  ;;  %v3822_v63 = vpop.f32.mrb[36].mxu0  ;;  %v425_v12 = vld [vmem:[#allocation2 + $0x88] sm:$0xff]  ;;  %v427_v60 = vld [vmem:[#allocation2 + $0xd8] sm:$0xff] }
 0x8b9   : > { %v2113_v3 = vmul.f32 %v3822_v63, %v5081_v26  ;;  %v2057_v5 = vpop.f32.mrb[37].mxu0  ;;  %v5331_v59 = vpack.c.bf16 %v425_v12, %v424_v58  ;;  %v428_v63 = vld [vmem:[#allocation2 + $0x100] sm:$0xff]  ;;  %p4652_p12 = pneg %p4651_p10 }
 0x8ba   : > { %v2112_v6 = vmul.f32 %v2057_v5, %v5083_v27  ;;  %4294 = vmatpush3.bf16.msra.mxu0 %v4293_v62 }
 0x8bb   : > { %4295 = vmatprep.subr.bf16.mxu0 %v4727_v4  ;;  %p4659_p7 = pnand %p4658_p4, %p4652_p12 }
 0x8bc   : > { %v4296_v11 = vpack.c.bf16 %v2113_v3, %v2112_v6  ;;  %v3825_v13 = vpop.f32.mrb[38].mxu0  ;;  %v429_v3 = vld [vmem:[#allocation2 + $0x128] sm:$0xff]  ;;  %v430_v6 = vld [vmem:[#allocation2 + $0x150] sm:$0xff] }
 0x8bd   : > { %v2115_v19 = vmul.f32 %v3825_v13, %v5088_v33  ;;  %v2067_v38 = vpop.f32.mrb[39].mxu0  ;;  %v5341_v5 = vpack.c.bf16 %v429_v3, %v428_v63 }
 0x8be   : > { %v2114_v20 = vmul.f32 %v2067_v38, %v5090_v34  ;;  %4297 = vmatpush3.bf16.msra.mxu0 %v4296_v11  ;;  %v431_v11 = vld [vmem:[#allocation2 + $0x178] sm:$0xff]  ;;  %v433_v38 = vld [vmem:[#allocation2 + $0x1c8] sm:$0xff] }
 0x8bf   : > { %4298 = vmatprep.subr.bf16.mxu0 %v4727_v4  ;;  %v5345_v13 = vpack.c.bf16 %v431_v11, %v430_v6 }
 0x8c0   : > { %v4299_v18 = vpack.c.bf16 %v2115_v19, %v2114_v20  ;;  %v3828_v17 = vpop.f32.mrb[40].mxu0  ;;  %v432_v19 = vld [vmem:[#allocation2 + $0x1a0] sm:$0xff] }
 0x8c1   : > { %v2117_v26 = vmul.f32 %v3828_v17, %v5095_v42  ;;  %v2077_v21 = vpop.f32.mrb[41].mxu0  ;;  %v5349_v20 = vpack.c.bf16 %v433_v38, %v432_v19  ;;  %v435_v17 = vld [vmem:[#allocation2 + $0x218] sm:$0xff] }
 0x8c2   : > { %v2116_v27 = vmul.f32 %v2077_v21, %v5097_v43  ;;  %4300 = vmatpush3.bf16.msra.mxu0 %v4299_v18  ;;  %v434_v18 = vld [vmem:[#allocation2 + $0x1f0] sm:$0xff]  ;;  %v420_v21 = vld [vmem:[#allocation2 + $0x238] sm:$0xff] }
 0x8c3   : > { %4301 = vmatprep.subr.bf16.mxu0 %v4727_v4 }
 0x8c4   : > { %v4302_v7 = vpack.c.bf16 %v2117_v26, %v2116_v27  ;;  %v3831_v23 = vpop.f32.mrb[42].mxu0  ;;  %v5353_v26 = vpack.c.bf16 %v435_v17, %v434_v18  ;;  %v421_v27 = vld [vmem:[#allocation2 + $0x260] sm:$0xff] }
 0x8c5   : > { %v2119_v33 = vmul.f32 %v3831_v23, %v5102_v15  ;;  %v2087_v1 = vpop.f32.mrb[43].mxu0  ;;  %v406_v15 = vld [vmem:[#allocation2 + $0x8] sm:$0xff]  ;;  %v5358_v23 = vpack.c.bf16 %v421_v27, %v420_v21 }
 0x8c6   : > { %v2118_v34 = vmul.f32 %v2087_v1, %v5104_v16  ;;  %4303 = vmatpush3.bf16.msra.mxu0 %v4302_v7  ;;  %v407_v16 = vld [vmem:[#allocation2 + $0x30] sm:$0xff]  ;;  %v436_v7 = vld [vmem:[#allocation2 + $0x240] sm:$0xff] }
 0x8c7   : > { %4304 = vmatprep.subr.bf16.mxu0 %v4727_v4 }
 0x8c8   : > { %v4305_v32 = vpack.c.bf16 %v2119_v33, %v2118_v34  ;;  %v3834_v35 = vpop.f32.mrb[44].mxu0  ;;  %v437_v33 = vld [vmem:[#allocation2 + $0x268] sm:$0xff] }
 0x8c9   : > { %v2121_v42 = vmul.f32 %v3834_v35, %v5109_v24  ;;  %v2097_v36 = vpop.f32.mrb[45].mxu0  ;;  %v5291_v24 = vpack.c.bf16 %v407_v16, %v406_v15  ;;  %v5360_v1 = vpack.c.bf16 %v437_v33, %v436_v7 }
 0x8ca   : > { %v2120_v43 = vmul.f32 %v2097_v36, %v5111_v25  ;;  %4306 = vmatpush3.bf16.msra.mxu0 %v4305_v32  ;;  %v5296_v25 = vld [vmem:[%s5570_s8] sm:$0xff] }
 0x8cb   : > { %4307 = vmatprep.subr.bf16.mxu0 %v4727_v4  ;;  %2195 = vperm.xlu1 %4593, %v5296_v25  }
 0x8cc   : > { %v4308_v37 = vpack.c.bf16 %v2121_v42, %v2120_v43  ;;  %4312 = vmatpush3.bf16.msra.mxu1 %v5291_v24  ;;  %2913 = vrot.lane.b32.xlu0 %v5296_v25, %s4730_s27 }
 0x8cd   : > { %4313 = vmatprep.subr.bf16.mxu1 %v4727_v4 }
 0x8ce   : > { %4309 = vmatpush3.bf16.msra.mxu0 %v4308_v37 }
 0x8cf   : > { %3870 = vmatprep.subr.mxu0 %v5592_v39 }
 0x8d0   : > { %2910 = vperm.xlu0 %4595, %v5296_v25  }
 0x8d1   : > { %3868 = vmatmul.mubr.f32.vlgmr.msra.gmra.mrb[46].mxu0 %v4966_v53  ;;  %v5300_v53 = vpack.c.bf16 %v409_v56, %v408_v50 }
 0x8d2   : > { %3872 = vmatprep.mubr.msk.f32.mxu0 %vm4722_vm0, %v5592_v39 }
 0x8d3   : > { %4315 = vmatpush3.bf16.msra.mxu1 %v5300_v53 }
 0x8d4   : > { %4316 = vmatprep.subr.bf16.mxu1 %v4727_v4  ;;  %2992 = vrot.lane.b32.xlu0 %v5296_v25, %s4733_s24 }
 0x8d7   : > { %4318 = vmatpush3.bf16.msra.mxu1 %v5304_v61 }
 0x8d8   : > { %4319 = vmatprep.subr.bf16.mxu1 %v4727_v4  ;;  %2994 = vrot.lane.b32.xlu0 %v5296_v25, %s4734_s22 }
 0x8db   : > { %4321 = vmatpush3.bf16.msra.mxu1 %v5308_v22 }
 0x8dc   : > { %4322 = vmatprep.subr.bf16.mxu1 %v4727_v4 }
 0x8df   : > { %4324 = vmatpush3.bf16.msra.mxu1 %v5312_v29 }
 0x8e0   : > { %4325 = vmatprep.subr.bf16.mxu1 %v4727_v4 }
 0x8e3   : > { %4327 = vmatpush3.bf16.msra.mxu1 %v5316_v47 }
 0x8e4   : > { %4328 = vmatprep.subr.bf16.mxu1 %v4727_v4 }
 0x8e7   : > { %4330 = vmatpush3.bf16.msra.mxu1 %v5320_v44 }
 0x8e8   : > { %4331 = vmatprep.subr.bf16.mxu1 %v4727_v4 }
 0x8eb   : > { %4333 = vmatpush3.bf16.msra.mxu1 %v5358_v23 }
 0x8ec   : > { %4358 = vmatprep.subr.bf16.mxu1 %v4727_v4 }
 0x93e   : > { %v2914_v0 = vpop.permute.xlu0 %2913 }
 0x94a   : > { %v2196_v34 = vpop.permute.xlu1 %2195 }
 0x9a4   : > { %v2188_v45 = vpop.f32.mrb[46].mxu0 }
 0x9a5   : > { %v2192_v49 = vadd.f32 %v2188_v45, %v5228_v28  ;;  %v3869_v51 = vpop.f32.mrb[47].mxu0  ;;  %v426_v28 = vld [vmem:[#allocation2 + $0xb0] sm:$0xff] }
 0x9a6   : > { %v5337_v62 = vpack.c.bf16 %v427_v60, %v426_v28 }
 0x9a7   : > { %v2193_v52 = vmax.f32 %v2192_v49, 0.0 }
 0x9a9   : > { %3871 = vmatpush3.msra.mxu0 %v2193_v52 }
 0x9aa   : > { %3873 = vmatmul.mubr.msk.f32.vlgmr.msra.gmra.mrb[48].mxu0 %vm693_vm2, %v2199_v54  ;;  %4334 = vmatprep.subr.bf16.mxu0 %v4727_v4 }
 0x9ab   : > { %4336 = vmatpush3.bf16.msra.mxu0 %v5326_v57  ;;  %3942 = vmatprep.mubr.msk.f32.mxu0 %vm4722_vm0, %v5592_v39 }
 0x9ac   : > { %4337 = vmatprep.subr.bf16.mxu0 %v4727_v4 }
 0x9af   : > { %4339 = vmatpush3.bf16.msra.mxu0 %v5331_v59 }
 0x9b0   : > { %4340 = vmatprep.subr.bf16.mxu0 %v4727_v4 }
 0x9b3   : > { %4342 = vmatpush3.bf16.msra.mxu0 %v5337_v62 }
 0x9b4   : > { %4343 = vmatprep.subr.bf16.mxu0 %v4727_v4 }
 0x9b7   : > { %4345 = vmatpush3.bf16.msra.mxu0 %v5341_v5 }
 0x9b8   : > { %4346 = vmatprep.subr.bf16.mxu0 %v4727_v4 }
 0x9bb   : > { %4348 = vmatpush3.bf16.msra.mxu0 %v5345_v13 }
 0x9bc   : > { %4349 = vmatprep.subr.bf16.mxu0 %v4727_v4 }
 0x9bf   : > { %4351 = vmatpush3.bf16.msra.mxu0 %v5349_v20 }
 0x9c0   : > { %4352 = vmatprep.subr.bf16.mxu0 %v4727_v4 }
 0x9c3   : > { %4354 = vmatpush3.bf16.msra.mxu0 %v5353_v26 }
 0x9c4   : > { %4355 = vmatprep.subr.bf16.mxu0 %v4727_v4 }
 0x9c7   : > { %4357 = vmatpush3.bf16.msra.mxu0 %v5360_v1 }
 0x9c8   : > { %4382 = vmatprep.subr.bf16.mxu0 %v4727_v4 }
 0xa7d   : > { %v2268_v32 = vpop.f32.mrb[48].mxu0 }
 0xa7e   : > { %v5366_v35 = vadd.f32 %v2268_v32, %v2196_v34  ;;  %v3874_v42 = vpop.f32.mrb[49].mxu0 }
 0xa80   : > { %3908 = vmatmul.mubr.f32.vlgmr.msra.gmra.mrb[34].mxu1 %v5366_v35  ;;  %3943 = vmatmul.mubr.f32.vlgmr.msra.gmra.mrb[50].mxu0 %v5366_v35 }
 0xa81   : > { %4360 = vmatpush3.bf16.msra.mxu1 %v5291_v24  ;;  %4384 = vmatpush3.bf16.msra.mxu0 %v5326_v57 }
 0xa82   : > { %4361 = vmatprep.subr.bf16.mxu1 %v4727_v4  ;;  %4385 = vmatprep.subr.bf16.mxu0 %v4727_v4 }
 0xa83   : > { %3977 = vmatprep.mubr.msk.f32.mxu1 %vm4722_vm0, %v5592_v39  ;;  %4012 = vmatprep.mubr.msk.f32.mxu0 %vm4722_vm0, %v5592_v39 }
 0xa85   : > { %4363 = vmatpush3.bf16.msra.mxu1 %v5300_v53  ;;  %4387 = vmatpush3.bf16.msra.mxu0 %v5331_v59 }
 0xa86   : > { %4364 = vmatprep.subr.bf16.mxu1 %v4727_v4  ;;  %4388 = vmatprep.subr.bf16.mxu0 %v4727_v4 }
 0xa89   : > { %4366 = vmatpush3.bf16.msra.mxu1 %v5304_v61  ;;  %4390 = vmatpush3.bf16.msra.mxu0 %v5337_v62 }
 0xa8a   : > { %4367 = vmatprep.subr.bf16.mxu1 %v4727_v4  ;;  %4391 = vmatprep.subr.bf16.mxu0 %v4727_v4 }
 0xa8d   : > { %4369 = vmatpush3.bf16.msra.mxu1 %v5308_v22  ;;  %4393 = vmatpush3.bf16.msra.mxu0 %v5341_v5 }
 0xa8e   : > { %4370 = vmatprep.subr.bf16.mxu1 %v4727_v4  ;;  %4394 = vmatprep.subr.bf16.mxu0 %v4727_v4 }
 0xa91   : > { %4372 = vmatpush3.bf16.msra.mxu1 %v5312_v29  ;;  %4396 = vmatpush3.bf16.msra.mxu0 %v5345_v13 }
 0xa92   : > { %4373 = vmatprep.subr.bf16.mxu1 %v4727_v4  ;;  %4397 = vmatprep.subr.bf16.mxu0 %v4727_v4 }
 0xa95   : > { %4375 = vmatpush3.bf16.msra.mxu1 %v5316_v47  ;;  %4399 = vmatpush3.bf16.msra.mxu0 %v5349_v20 }
 0xa96   : > { %4376 = vmatprep.subr.bf16.mxu1 %v4727_v4  ;;  %4400 = vmatprep.subr.bf16.mxu0 %v4727_v4 }
 0xa99   : > { %4378 = vmatpush3.bf16.msra.mxu1 %v5320_v44  ;;  %4402 = vmatpush3.bf16.msra.mxu0 %v5353_v26 }
 0xa9a   : > { %4379 = vmatprep.subr.bf16.mxu1 %v4727_v4  ;;  %4403 = vmatprep.subr.bf16.mxu0 %v4727_v4 }
 0xa9d   : > { %4381 = vmatpush3.bf16.msra.mxu1 %v5358_v23  ;;  %4405 = vmatpush3.bf16.msra.mxu0 %v5360_v1 }
 0xa9e   : > { %4406 = vmatprep.subr.bf16.mxu1 %v4727_v4  ;;  %4430 = vmatprep.subr.bf16.mxu0 %v4727_v4 }
 0xb53   : > { %v5406_v36 = vpop.f32.mrb[34].mxu1  ;;  %v5408_v43 = vpop.f32.mrb[50].mxu0 }
 0xb54   : > { %3978 = vmatmul.mubr.f32.vlgmr.msra.gmra.mrb[36].mxu1 %v5406_v36  ;;  %4013 = vmatmul.mubr.f32.vlgmr.msra.gmra.mrb[52].mxu0 %v5408_v43  ;;  %v3909_v37 = vpop.f32.mrb[35].mxu1  ;;  %v3944_v15 = vpop.f32.mrb[51].mxu0 }
 0xb55   : > { %4408 = vmatpush3.bf16.msra.mxu1 %v5291_v24  ;;  %4432 = vmatpush3.bf16.msra.mxu0 %v5326_v57 }
 0xb56   : > { %4409 = vmatprep.subr.bf16.mxu1 %v4727_v4  ;;  %4433 = vmatprep.subr.bf16.mxu0 %v4727_v4 }
 0xb57   : > { %4047 = vmatprep.mubr.msk.f32.mxu1 %vm4722_vm0, %v5592_v39  ;;  %4082 = vmatprep.mubr.msk.f32.mxu0 %vm4722_vm0, %v5592_v39 }
 0xb59   : > { %4411 = vmatpush3.bf16.msra.mxu1 %v5300_v53  ;;  %4435 = vmatpush3.bf16.msra.mxu0 %v5331_v59 }
 0xb5a   : > { %4412 = vmatprep.subr.bf16.mxu1 %v4727_v4  ;;  %4436 = vmatprep.subr.bf16.mxu0 %v4727_v4 }
 0xb5d   : > { %4414 = vmatpush3.bf16.msra.mxu1 %v5304_v61  ;;  %4438 = vmatpush3.bf16.msra.mxu0 %v5337_v62 }
 0xb5e   : > { %4415 = vmatprep.subr.bf16.mxu1 %v4727_v4  ;;  %4439 = vmatprep.subr.bf16.mxu0 %v4727_v4 }
 0xb61   : > { %4417 = vmatpush3.bf16.msra.mxu1 %v5308_v22  ;;  %4441 = vmatpush3.bf16.msra.mxu0 %v5341_v5 }
 0xb62   : > { %4418 = vmatprep.subr.bf16.mxu1 %v4727_v4  ;;  %4442 = vmatprep.subr.bf16.mxu0 %v4727_v4 }
 0xb65   : > { %4420 = vmatpush3.bf16.msra.mxu1 %v5312_v29  ;;  %4444 = vmatpush3.bf16.msra.mxu0 %v5345_v13 }
 0xb66   : > { %4421 = vmatprep.subr.bf16.mxu1 %v4727_v4  ;;  %4445 = vmatprep.subr.bf16.mxu0 %v4727_v4 }
 0xb69   : > { %4423 = vmatpush3.bf16.msra.mxu1 %v5316_v47  ;;  %4447 = vmatpush3.bf16.msra.mxu0 %v5349_v20 }
 0xb6a   : > { %4424 = vmatprep.subr.bf16.mxu1 %v4727_v4  ;;  %4448 = vmatprep.subr.bf16.mxu0 %v4727_v4 }
 0xb6d   : > { %4426 = vmatpush3.bf16.msra.mxu1 %v5320_v44  ;;  %4450 = vmatpush3.bf16.msra.mxu0 %v5353_v26 }
 0xb6e   : > { %4427 = vmatprep.subr.bf16.mxu1 %v4727_v4  ;;  %4451 = vmatprep.subr.bf16.mxu0 %v4727_v4 }
 0xb71   : > { %4429 = vmatpush3.bf16.msra.mxu1 %v5358_v23  ;;  %4453 = vmatpush3.bf16.msra.mxu0 %v5360_v1 }
 0xb72   : > { %4478 = vmatprep.subr.bf16.mxu0 %v4727_v4  ;;  %4454 = vmatprep.subr.bf16.mxu1 %v4727_v4 }
 0xc27   : > { %v5448_v16 = vpop.f32.mrb[36].mxu1  ;;  %v5450_v41 = vpop.f32.mrb[52].mxu0 }
 0xc28   : > { %v4506_v50 = vpack.c.bf16 %v5408_v43, %v5450_v41  ;;  %4048 = vmatmul.mubr.f32.vlgmr.msra.gmra.mrb[38].mxu1 %v5448_v16  ;;  %4083 = vmatmul.mubr.f32.vlgmr.msra.gmra.mrb[54].mxu0 %v5450_v41  ;;  %v3979_v56 = vpop.f32.mrb[37].mxu1  ;;  %v4014_v40 = vpop.f32.mrb[53].mxu0 }
 0xc29   : > { %4480 = vmatpush3.bf16.msra.mxu0 %v5326_v57  ;;  %4456 = vmatpush3.bf16.msra.mxu1 %v5291_v24 }
 0xc2a   : > { %4481 = vmatprep.subr.bf16.mxu0 %v4727_v4  ;;  %4457 = vmatprep.subr.bf16.mxu1 %v4727_v4 }
 0xc2b   : > { %4152 = vmatprep.mubr.msk.f32.mxu0 %vm4722_vm0, %v5592_v39  ;;  %4117 = vmatprep.mubr.msk.f32.mxu1 %vm4722_vm0, %v5592_v39 }
 0xc2d   : > { %4483 = vmatpush3.bf16.msra.mxu0 %v5331_v59  ;;  %4459 = vmatpush3.bf16.msra.mxu1 %v5300_v53 }
 0xc2e   : > { %4484 = vmatprep.subr.bf16.mxu0 %v4727_v4  ;;  %4460 = vmatprep.subr.bf16.mxu1 %v4727_v4 }
 0xc31   : > { %4486 = vmatpush3.bf16.msra.mxu0 %v5337_v62  ;;  %4462 = vmatpush3.bf16.msra.mxu1 %v5304_v61 }
 0xc32   : > { %4487 = vmatprep.subr.bf16.mxu0 %v4727_v4  ;;  %4463 = vmatprep.subr.bf16.mxu1 %v4727_v4 }
 0xc35   : > { %4489 = vmatpush3.bf16.msra.mxu0 %v5341_v5  ;;  %4465 = vmatpush3.bf16.msra.mxu1 %v5308_v22  ;;  %v4732_v22 = vmov 106  }
 0xc36   : > { %4490 = vmatprep.subr.bf16.mxu0 %v4727_v4  ;;  %4466 = vmatprep.subr.bf16.mxu1 %v4727_v4 }
 0xc37   : > { %4594 = vset.pattern.permute.xlu1 %v4732_v22 }
 0xc38   : > { %2833 = vperm.xlu1 %4594, %v5296_v25  }
 0xc39   : > { %4492 = vmatpush3.bf16.msra.mxu0 %v5345_v13  ;;  %4468 = vmatpush3.bf16.msra.mxu1 %v5312_v29 }
 0xc3a   : > { %4493 = vmatprep.subr.bf16.mxu0 %v4727_v4  ;;  %4469 = vmatprep.subr.bf16.mxu1 %v4727_v4 }
 0xc3d   : > { %4495 = vmatpush3.bf16.msra.mxu0 %v5349_v20  ;;  %4471 = vmatpush3.bf16.msra.mxu1 %v5316_v47  ;;  %v4509_v47 = vpack.c.bf16 %v5406_v36, %v5366_v35 }
 0xc3e   : > { %4496 = vmatprep.subr.bf16.mxu0 %v4727_v4  ;;  %4472 = vmatprep.subr.bf16.mxu1 %v4727_v4 }
 0xc41   : > { %4498 = vmatpush3.bf16.msra.mxu0 %v5353_v26  ;;  %4474 = vmatpush3.bf16.msra.mxu1 %v5320_v44 }
 0xc42   : > { %4499 = vmatprep.subr.bf16.mxu0 %v4727_v4  ;;  %4475 = vmatprep.subr.bf16.mxu1 %v4727_v4 }
 0xc45   : > { %4501 = vmatpush3.bf16.msra.mxu0 %v5360_v1  ;;  %4477 = vmatpush3.bf16.msra.mxu1 %v5358_v23 }
 0xc46   : > { %4502 = vmatprep.subr.bf16.mxu1 %v4727_v4  ;;  %4181 = vmatprep.subr.mxu0 %v5592_v39 }
 0xcb7   : > { %v2834_v44 = vpop.permute.xlu1 %2833 }
 0xcfb   : > { %v2618_v24 = vpop.f32.mrb[38].mxu1  ;;  %v2688_v53 = vpop.f32.mrb[54].mxu0 }
 0xcfc   : > { %v4512_v55 = vpack.c.bf16 %v2618_v24, %v5448_v16  ;;  %4153 = vmatmul.mubr.f32.vlgmr.msra.gmra.mrb[56].mxu0 %v2688_v53  ;;  %v4049_v61 = vpop.f32.mrb[39].mxu1  ;;  %v4084_v9 = vpop.f32.mrb[55].mxu0  ;;  %4118 = vmatmul.mubr.f32.vlgmr.msra.gmra.mrb[40].mxu1 %v2618_v24 }
 0xcfd   : > { %4173 = vmatprep.mubr.msk.f32.mxu1 %vm4722_vm0, %v5592_v39  ;;  %4183 = vmatprep.mubr.msk.f32.mxu0 %vm4722_vm0, %v5592_v39 }
 0xdcf   : > { %v2828_v2 = vpop.f32.mrb[56].mxu0  ;;  %v2758_v8 = vpop.f32.mrb[40].mxu1 }
 0xdd0   : > { %v4503_v29 = vpack.c.bf16 %v2688_v53, %v2828_v2  ;;  %v4119_v10 = vpop.f32.mrb[41].mxu1  ;;  %v4154_v30 = vpop.f32.mrb[57].mxu0 }
 0xdd2   : > { %4504 = vmatpush3.bf16.msra.mxu1 %v4503_v29 }
 0xdd3   : > { %4505 = vmatprep.subr.bf16.mxu1 %v4727_v4 }
 0xdd6   : > { %4507 = vmatpush3.bf16.msra.mxu1 %v4506_v50 }
 0xdd7   : > { %4508 = vmatprep.subr.bf16.mxu1 %v4727_v4 }
 0xdda   : > { %4510 = vmatpush3.bf16.msra.mxu1 %v4509_v47 }
 0xddb   : > { %4511 = vmatprep.subr.bf16.mxu1 %v4727_v4  ;;  %v2911_v4 = vpop.permute.xlu0 %2910 }
 0xddc   : > { %v4518_v45 = vadd.f32 %v2911_v4, %v2834_v44 }
 0xdde   : > { %4513 = vmatpush3.bf16.msra.mxu1 %v4512_v55 }
 0xddf   : > { %4171 = vmatprep.subr.mxu1 %v5592_v39  ;;  %v2993_v54 = vpop.permute.xlu0 %2992 }
 0xde2   : > { %4172 = vmatpush3.msra.mxu1 %v2758_v8 }
 0xde3   : > { %4174 = vmatmul.mubr.msk.f32.vlgmr.msra.gmra.mrb[42].mxu1 %vm2836_vm4, %v5296_v25  ;;  %4176 = vmatprep.subr.mxu1 %v5592_v39  ;;  %v2995_v57 = vpop.permute.xlu0 %2994 }
 0xde4   : > { %4177 = vmatpush3.msra.mxu1 %v4620_v31  ;;  %4178 = vmatprep.mubr.msk.f32.mxu1 %vm4722_vm0, %v5592_v39  ;;  %v4735_v39 = vmov 0  }
 0xde5   : > { %4596 = vset.pattern.permute.xlu0 %v4735_v39 }
 0xdeb   : > { %4179 = vmatmul.mubr.msk.f32.vlgmr.msra.gmra.mrb[42].mxu1 %vm693_vm2, %v2914_v0 }
 0xebe   : > { %v2983_v46 = vpop.f32.mrb[42].mxu1 }
 0xebf   : > { %v4519_v48 = vadd.f32 %v4518_v45, %v2983_v46  ;;  %v4180_v49 = vpop.f32.mrb[43].mxu1 }
 0xec1   : > { %2988 = vadd.xlane.f32.xlu1 %v4519_v48 }
 0xf4e   : > { %v2989_v51 = vpop.xlane.xlu1 %2988 }
 0xf4f   : > { %v2991_v52 = vmul.f32 0.0078125, %v2989_v51 }
 0xf51   : > { %4182 = vmatpush3.msra.mxu0 %v2991_v52 }
 0xf52   : > { %4184 = vmatmul.mubr.msk.f32.vlgmr.msra.gmra.mrb[58].mxu0 %vm693_vm2, %v2993_v54 }
0x1025   : > { %v3065_v58 = vpop.f32.mrb[58].mxu0 }
0x1026   : > { %v3066_v12 = vadd.f32 %v3065_v58, %v2995_v57  ;;  %v4185_v59 = vpop.f32.mrb[59].mxu0 }
0x1028   : > { %v3285_v28 = vmul.f32 -1.442695, %v3066_v12 }
0x102a   : > { %4615 = vpow2.f32 %v3285_v28 }
0x1034   : > { %v4616_v60 = vpop.eup %4615 }
0x1035   : > { %v3072_v62 = vadd.f32 1.0, %v4616_v60 }
0x1037   : > { %4617 = vrcp.f32 %v3072_v62 }
0x1041   : > { %v4618_v25 = vpop.eup %4617 }
0x1042   : > { %3077 = vperm.xlu0 %4596, %v4618_v25  }
0x10c1   : > { %v3078_v63 = vpop.permute.xlu0 %3077 }
0x10c2   : > { %v3080_v3 = vmul.f32 %v4519_v48, %v3078_v63 }
0x10c4   : > { %v3081_v5 = vmax.f32 %v3080_v3, 0.0 }
0x10c6   : > { %3082 = vst [vmem:[%s368_s11] sm:$0xff] %v3081_v5 }
0x10c7   : > { %4662 = shalt.err (!%p4659_p7)
}
0x10c8   : > { %s4663_s21 = scalar_lea.hbm %s5520_s16, 128  ;;  %s4667_s22 = scalar_lea.hbm %s5571_s9, 256 }
0x10c9   : > { %p4664_p8 = scmp.ne.s32.totalorder %s5520_s16, %s4663_s21  ;;  %p4668_p1 = scmp.lt.u32.totalorder %s5520_s16, %s5571_s9 }
0x10ca   : > { %p4669_p0 = scmp.lt.u32.totalorder %s4667_s22, %s4663_s21  ;;  %p4671_p6 = scmp.lt.u32.totalorder %s4663_s21, %s5520_s16 }
0x10cb   : > { %p4665_p11 = pnand %p4664_p8, %p5593_p9 }
0x10cc   : > { %p4670_p5 = por %p4669_p0, %p4668_p1 }
0x10cd   : > { %p4666_p13 = pneg %p4665_p11 }
0x10ce   : > { %p4672_p10 = por %p4671_p6, %p4670_p5 }
0x10d0   : > { %p4673_p12 = pnand %p4672_p10, %p4666_p13 }
0x10d2   : > { %4676 = shalt.err (!%p4673_p12)
}
0x10d3   : > { %4526 = dma.vmem_to_hbm [thread:$0]  (%p5593_p9), %s5522_s15, 128, %s5520_s16, %s3084_s17  }
0x10d4 PF: > { %p4538_p2 = scmp.ge.s32.totalorder %s4715_s12, 2  ;;  %s3109_s23 = sand.u32 1, %s4703_s30  }
0x10d5   : > { %p5594_p3 = scmp.ne.s32.totalorder %s5585_s20, 0  ;;  %s3110_s11 = scalar_lea.sflag [#allocation4], %s3109_s23 }
0x10d7   : > { %p4533_p4 = pnand %p4538_p2, %p5594_p3 }
0x10d9   : > { %4698 = dma.done.wait (!%p4533_p4), %s3110_s11, 128  }
0x10da   : > { %4700 = vsyncadd (!%p4533_p4), %s3110_s11, 4294967168  ;;  %s5595_s12 = sld [smem:[#allocation9_spill]]  ;;  %s5596_s18 = sld [smem:[#allocation8_spill]] }
0x10db   : > { %s5597_s11 = sld [smem:[#allocation10_spill]]  ;;  %s5598_s30 = smov %s4707_s10 }
0x10e0   : > { %p20_p7 = scmp.ge.s32.totalorder %s5595_s12, 4   ;;  %s5599_s10 = smov %s5596_s18 }
0x10e2   :  { %22 = sbr.rel (!%p20_p7) target bundleno = 6 (0x6), region = 104 }
0x10e9   :  { %3115 = vsyncpa [#allocation3], 1 }
0x10ea   :  { %3117 = vsyncpa [#allocation3 + $0x1], 1 }
0x10eb   :  { %3118 = vsyncpa [#allocation4], 1 }
0x10ec   :  { %3120 = vsyncpa [#allocation4 + $0x1], 1 }

</bundles_post_ra>
